<compile_context>
chip_gen: v6e
topology: v6e:2x2x1
jax: 0.10.0
libtpu: 0.0.40
codegen_flags: <defaults>
</compile_context>

<pallas_src>
import jax
import jax.numpy as jnp
from jax import lax
from jax.experimental import pallas as pl
from jax.experimental.pallas import tpu as pltpu


def filternet_kernel(xr_ref, xi_ref, ilens_ref, maxlen_ref,
                     w_ih_ref, b_ref, w_hh_ref,
                     wl_ref, bl_ref, w12_ref, b12_ref,
                     out_ref, gates_ref, hhist_ref):
    T, N, U4 = gates_ref.shape
    U = hhist_ref.shape[2]

    # Constant per-column scale: x2 on the g-gate block. With the raw gate
    # pre-activation doubled, tanh(g) == 2*sigmoid(2g) - 1, so a single
    # sigmoid over the whole (N, 4U) vreg serves all four gates.
    col = lax.broadcasted_iota(jnp.int32, (1, U4), 1)
    gscale = jnp.where((col >= 2 * U) & (col < 3 * U), 2.0, 1.0)

    # ---- hoisted, non-recurrent input projection: one batched MXU call ----
    xr = xr_ref[...]                                   # (T*N, F)
    xi = xi_ref[...]
    mag = jnp.sqrt(xr * xr + xi * xi)                  # |xs|  (bulk VPU/EUP)
    gates_in = (jnp.dot(mag, w_ih_ref[...], preferred_element_type=jnp.float32)
                + b_ref[...]) * gscale                 # (T*N, 4U); bias + g-scale folded once
    gates_ref[...] = gates_in.reshape(T, N, U4)

    w_hh = w_hh_ref[...] * gscale                      # (U, 4U), hoisted load + scale

    # ---- serial recurrence: h @ W_hh + ONE sigmoid + cell update per step ----
    def step(t, carry):
        h, c = carry
        gates = gates_ref[t] + jnp.dot(h, w_hh, preferred_element_type=jnp.float32)
        sg = jax.nn.sigmoid(gates)                     # single full-vreg transcendental
        i_g = sg[:, 0 * U:1 * U]
        f_g = sg[:, 1 * U:2 * U]
        g_g = 2.0 * sg[:, 2 * U:3 * U] - 1.0           # == tanh(raw g); VPU only
        o_g = sg[:, 3 * U:4 * U]
        c_new = f_g * c + i_g * g_g
        h_new = o_g * jnp.tanh(c_new)
        hhist_ref[t] = h_new                           # VMEM scratch history
        return (h_new, c_new)

    h0 = jnp.zeros((N, U), jnp.float32)
    c0 = jnp.zeros((N, U), jnp.float32)
    lax.fori_loop(0, T, step, (h0, c0), unroll=True)

    # ---- hoisted epilogue: pad_packed zero-fill, l_last, fused mask heads ----
    ilens = ilens_ref[...]                             # (N, 1) int32
    max_ilen = maxlen_ref[0]                           # SMEM scalar
    t_ids = lax.broadcasted_iota(jnp.int32, (T, N, 1), 0)
    h_hist = jnp.where(t_ids < ilens, hhist_ref[...], 0.0)   # (T, N, U)

    proj = jnp.tanh(jnp.dot(h_hist.reshape(T * N, U), wl_ref[...],
                            preferred_element_type=jnp.float32) + bl_ref[...])
    heads = jnp.tanh(jnp.dot(proj, w12_ref[...],
                             preferred_element_type=jnp.float32) + b12_ref[...])
    heads = heads.reshape(T, N, -1)                    # (T, N, 2F)

    # F.pad(..., value=0) beyond max(ilens); single bulk store.
    out_ref[...] = jnp.where(t_ids < max_ilen, heads, 0.0)


def filter_net_forward(x_real, x_imag, ilens, params):
    """x_real, x_imag: (B, F, C, T); ilens: (B,) int32.
    Returns (out_real, out_imag), each (B, F, C, T)."""
    B, Fdim, C, T = x_real.shape
    N = B * C

    # glue: (B,F,C,T) -> (T,B,C,F) -> time-major rows (T*N, F), n = b*C + c
    def to_rows(x):
        return jnp.transpose(x, (3, 0, 2, 1)).reshape(T * N, Fdim).astype(jnp.float32)

    xr_rows = to_rows(x_real)
    xi_rows = to_rows(x_imag)
    ilens_n = jnp.repeat(ilens.astype(jnp.int32), C).reshape(N, 1)
    max_ilen = jnp.max(ilens).astype(jnp.int32).reshape(1)

    U = params["w_hh"].shape[0]

    # fuse the two mask heads: (P, 2F) / (1, 2F)
    w12 = jnp.concatenate([params["w1"], params["w2"]], axis=1)
    b12 = jnp.concatenate([params["b1"], params["b2"]], axis=1)

    vmem = pl.BlockSpec(memory_space=pltpu.MemorySpace.VMEM)
    smem = pl.BlockSpec(memory_space=pltpu.MemorySpace.SMEM)

    out = pl.pallas_call(
        filternet_kernel,
        out_shape=jax.ShapeDtypeStruct((T, N, 2 * Fdim), jnp.float32),
        in_specs=[vmem, vmem, vmem, smem,          # xr, xi, ilens, max_ilen
                  vmem, vmem, vmem,                # w_ih, b, w_hh
                  vmem, vmem, vmem, vmem],         # wl, bl, w12, b12
        out_specs=vmem,
        scratch_shapes=[pltpu.VMEM((T, N, 4 * U), jnp.float32),   # gates_in
                        pltpu.VMEM((T, N, U), jnp.float32)],      # h history
    )(xr_rows, xi_rows, ilens_n, max_ilen,
      params["w_ih"], params["b"], params["w_hh"],
      params["wl"], params["bl"], w12, b12)

    # glue: (T,N,2F) -> (T,B,C,F)x2 -> permute -> (B,F,C,T)
    out = out.reshape(T, B, C, 2 * Fdim)
    out_r = jnp.transpose(out[..., :Fdim], (1, 3, 2, 0))
    out_i = jnp.transpose(out[..., Fdim:], (1, 3, 2, 0))
    return out_r, out_i


def init_params(key, idim, units, projs):
    ks = jax.random.split(key, 10)
    k_lstm = 1.0 / jnp.sqrt(units)
    k_l = 1.0 / jnp.sqrt(units)      # l_last fan_in = units
    k_h = 1.0 / jnp.sqrt(projs)      # mask heads fan_in = projs

    def u(k, shape, scale):
        return jax.random.uniform(k, shape, jnp.float32, -scale, scale)

    return {
        # LSTM weights stored transposed for x @ W layout; gate order i,f,g,o
        "w_ih": u(ks[0], (idim, 4 * units), k_lstm),
        "w_hh": u(ks[1], (units, 4 * units), k_lstm),
        "b": u(ks[2], (1, 4 * units), k_lstm) + u(ks[3], (1, 4 * units), k_lstm),
        # espnet RNN.l_last: units -> projs
        "wl": u(ks[4], (units, projs), k_l),
        "bl": u(ks[5], (1, projs), k_l),
        # two mask heads: projs -> idim
        "w1": u(ks[6], (projs, idim), k_h),
        "b1": u(ks[7], (1, idim), k_h),
        "w2": u(ks[8], (projs, idim), k_h),
        "b2": u(ks[9], (1, idim), k_h),
    }
    # TODO(synk): multi-layer / bidirectional ('blstm', 'vgg*', RNNP) variants not covered;
    # this instantiation is type='lstm', layers=1.


if __name__ == "__main__":
    B, Fdim, C, T = 2, 16, 4, 8
    units, projs = 32, 16

    key = jax.random.PRNGKey(0)
    k1, k2, kp = jax.random.split(key, 3)
    x_real = jax.random.normal(k1, (B, Fdim, C, T), jnp.float32)
    x_imag = jax.random.normal(k2, (B, Fdim, C, T), jnp.float32)
    ilens = jnp.array([T, T - 2], dtype=jnp.int32)

    params = init_params(kp, Fdim, units, projs)

    out_r, out_i = filter_net_forward(x_real, x_imag, ilens, params)
    jax.block_until_ready((out_r, out_i))

    assert out_r.shape == (B, Fdim, C, T) and out_i.shape == (B, Fdim, C, T)
    assert bool(jnp.all(jnp.isfinite(out_r))) and bool(jnp.all(jnp.isfinite(out_i)))
    print("KERNEL_OK")
</pallas_src>

<mosaic_0001>
module attributes {stable_mosaic.version = 11 : i64} {
  func.func @filternet_kernel(%arg0: memref<64x16xf32, #tpu.memory_space<vmem>>, %arg1: memref<64x16xf32, #tpu.memory_space<vmem>>, %arg2: memref<8x1xi32, #tpu.memory_space<vmem>>, %arg3: memref<1xi32, #tpu.memory_space<smem>>, %arg4: memref<16x128xf32, #tpu.memory_space<vmem>>, %arg5: memref<1x128xf32, #tpu.memory_space<vmem>>, %arg6: memref<32x128xf32, #tpu.memory_space<vmem>>, %arg7: memref<32x16xf32, #tpu.memory_space<vmem>>, %arg8: memref<1x16xf32, #tpu.memory_space<vmem>>, %arg9: memref<16x32xf32, #tpu.memory_space<vmem>>, %arg10: memref<1x32xf32, #tpu.memory_space<vmem>>, %arg11: memref<8x8x32xf32, #tpu.memory_space<vmem>>, %arg12: memref<8x8x128xf32, #tpu.memory_space<vmem>>, %arg13: memref<8x8x32xf32, #tpu.memory_space<vmem>>) attributes {dimension_semantics = [], scalar_prefetch = 0 : i64, scratch_operands = 2 : i64, tpu.core_type = #tpu.core_type<tc>} {
    %0 = tpu.iota {dimensions = array<i32: 1>} : vector<1x128xi32>
    %c64_i32 = arith.constant 64 : i32
    %1 = vector.broadcast %c64_i32 : i32 to vector<1x128xi32>
    %2 = arith.cmpi sge, %0, %1 : vector<1x128xi32>
    %c96_i32 = arith.constant 96 : i32
    %3 = vector.broadcast %c96_i32 : i32 to vector<1x128xi32>
    %4 = arith.cmpi slt, %0, %3 : vector<1x128xi32>
    %5 = arith.andi %2, %4 : vector<1x128xi1>
    %cst = arith.constant 2.000000e+00 : f32
    %cst_0 = arith.constant 1.000000e+00 : f32
    %6 = vector.broadcast %cst : f32 to vector<1x128xf32>
    %7 = vector.broadcast %cst_0 : f32 to vector<1x128xf32>
    %8 = arith.select %5, %6, %7 : vector<1x128xi1>, vector<1x128xf32>
    %c0 = arith.constant 0 : index
    %c0_1 = arith.constant 0 : index
    %9 = vector.load %arg0[%c0, %c0_1] : memref<64x16xf32, #tpu.memory_space<vmem>>, vector<64x16xf32>
    %c0_2 = arith.constant 0 : index
    %c0_3 = arith.constant 0 : index
    %10 = vector.load %arg1[%c0_2, %c0_3] : memref<64x16xf32, #tpu.memory_space<vmem>>, vector<64x16xf32>
    %11 = arith.mulf %9, %9 : vector<64x16xf32>
    %12 = arith.mulf %10, %10 : vector<64x16xf32>
    %13 = arith.addf %11, %12 : vector<64x16xf32>
    %14 = math.sqrt %13 : vector<64x16xf32>
    %c0_4 = arith.constant 0 : index
    %c0_5 = arith.constant 0 : index
    %15 = vector.load %arg4[%c0_4, %c0_5] : memref<16x128xf32, #tpu.memory_space<vmem>>, vector<16x128xf32>
    %cst_6 = arith.constant dense<0.000000e+00> : vector<64x128xf32>
    %16 = tpu.matmul %14, %15, %cst_6 {dimension_numbers = #tpu.dot_dimension_numbers<[1], [0], [0], [1], [0, 0, 1, 1], [], []>} : vector<64x16xf32>, vector<16x128xf32>, vector<64x128xf32> -> vector<64x128xf32>
    %c0_7 = arith.constant 0 : index
    %c0_8 = arith.constant 0 : index
    %17 = vector.load %arg5[%c0_7, %c0_8] : memref<1x128xf32, #tpu.memory_space<vmem>>, vector<1x128xf32>
    %18 = vector.broadcast %17 : vector<1x128xf32> to vector<64x128xf32>
    %19 = arith.addf %16, %18 : vector<64x128xf32>
    %20 = vector.broadcast %8 : vector<1x128xf32> to vector<64x128xf32>
    %21 = arith.mulf %19, %20 : vector<64x128xf32>
    %22 = vector.shape_cast %21 : vector<64x128xf32> to vector<8x8x128xf32>
    %c0_9 = arith.constant 0 : index
    %c0_10 = arith.constant 0 : index
    %c0_11 = arith.constant 0 : index
    %23 = vector.load %arg12[%c0_9, %c0_10, %c0_11] : memref<8x8x128xf32, #tpu.memory_space<vmem>>, vector<8x8x128xf32>
    tpu.vector_store %arg12[%c0_9, %c0_10, %c0_11], %22 {strides = array<i32>} : memref<8x8x128xf32, #tpu.memory_space<vmem>>, vector<8x8x128xf32>,
    %c0_12 = arith.constant 0 : index
    %c0_13 = arith.constant 0 : index
    %24 = vector.load %arg6[%c0_12, %c0_13] : memref<32x128xf32, #tpu.memory_space<vmem>>, vector<32x128xf32>
    %25 = vector.broadcast %8 : vector<1x128xf32> to vector<32x128xf32>
    %26 = arith.mulf %24, %25 : vector<32x128xf32>
    %cst_14 = arith.constant 0.000000e+00 : f32
    %27 = vector.broadcast %cst_14 : f32 to vector<8x32xf32>
    %cst_15 = arith.constant 0.000000e+00 : f32
    %28 = vector.broadcast %cst_15 : f32 to vector<8x32xf32>
    %c0_i32 = arith.constant 0 : i32
    %29 = arith.index_cast %c0_i32 : i32 to index
    %c0_16 = arith.constant 0 : index
    %c0_17 = arith.constant 0 : index
    %30 = vector.load %arg12[%29, %c0_16, %c0_17] : memref<8x8x128xf32, #tpu.memory_space<vmem>>, vector<1x8x128xf32>
    %31 = vector.shape_cast %30 : vector<1x8x128xf32> to vector<8x128xf32>
    %cst_18 = arith.constant dense<0.000000e+00> : vector<8x128xf32>
    %32 = tpu.matmul %27, %26, %cst_18 {dimension_numbers = #tpu.dot_dimension_numbers<[1], [0], [0], [1], [0, 0, 1, 1], [], []>} : vector<8x32xf32>, vector<32x128xf32>, vector<8x128xf32> -> vector<8x128xf32>
    %33 = arith.addf %31, %32 : vector<8x128xf32>
    %34 = arith.negf %33 : vector<8x128xf32>
    %35 = math.exp %34 : vector<8x128xf32>
    %cst_19 = arith.constant 1.000000e+00 : f32
    %36 = vector.broadcast %cst_19 : f32 to vector<8x128xf32>
    %37 = arith.addf %36, %35 : vector<8x128xf32>
    %38 = arith.divf %36, %37 : vector<8x128xf32>
    %39 = vector.extract_strided_slice %38 {offsets = [0, 0], sizes = [8, 32], strides = [1, 1]} : vector<8x128xf32> to vector<8x32xf32>
    %40 = vector.extract_strided_slice %38 {offsets = [0, 32], sizes = [8, 32], strides = [1, 1]} : vector<8x128xf32> to vector<8x32xf32>
    %41 = vector.extract_strided_slice %38 {offsets = [0, 64], sizes = [8, 32], strides = [1, 1]} : vector<8x128xf32> to vector<8x32xf32>
    %cst_20 = arith.constant 2.000000e+00 : f32
    %42 = vector.broadcast %cst_20 : f32 to vector<8x32xf32>
    %43 = arith.mulf %42, %41 : vector<8x32xf32>
    %cst_21 = arith.constant 1.000000e+00 : f32
    %44 = vector.broadcast %cst_21 : f32 to vector<8x32xf32>
    %45 = arith.subf %43, %44 : vector<8x32xf32>
    %46 = vector.extract_strided_slice %38 {offsets = [0, 96], sizes = [8, 32], strides = [1, 1]} : vector<8x128xf32> to vector<8x32xf32>
    %47 = arith.mulf %40, %28 : vector<8x32xf32>
    %48 = arith.mulf %39, %45 : vector<8x32xf32>
    %49 = arith.addf %47, %48 : vector<8x32xf32>
    %50 = math.tanh %49 : vector<8x32xf32>
    %51 = arith.mulf %46, %50 : vector<8x32xf32>
    %52 = arith.index_cast %c0_i32 : i32 to index
    %c0_22 = arith.constant 0 : index
    %c0_23 = arith.constant 0 : index
    %53 = vector.load %arg13[%52, %c0_22, %c0_23] : memref<8x8x32xf32, #tpu.memory_space<vmem>>, vector<1x8x32xf32>
    %54 = vector.shape_cast %53 : vector<1x8x32xf32> to vector<8x32xf32>
    %55 = vector.shape_cast %51 : vector<8x32xf32> to vector<1x8x32xf32>
    tpu.vector_store %arg13[%52, %c0_22, %c0_23], %55 {strides = array<i32>} : memref<8x8x32xf32, #tpu.memory_space<vmem>>, vector<1x8x32xf32>,
    %c1_i32 = arith.constant 1 : i32
    %56 = arith.index_cast %c1_i32 : i32 to index
    %c0_24 = arith.constant 0 : index
    %c0_25 = arith.constant 0 : index
    %57 = vector.load %arg12[%56, %c0_24, %c0_25] : memref<8x8x128xf32, #tpu.memory_space<vmem>>, vector<1x8x128xf32>
    %58 = vector.shape_cast %57 : vector<1x8x128xf32> to vector<8x128xf32>
    %cst_26 = arith.constant dense<0.000000e+00> : vector<8x128xf32>
    %59 = tpu.matmul %51, %26, %cst_26 {dimension_numbers = #tpu.dot_dimension_numbers<[1], [0], [0], [1], [0, 0, 1, 1], [], []>} : vector<8x32xf32>, vector<32x128xf32>, vector<8x128xf32> -> vector<8x128xf32>
    %60 = arith.addf %58, %59 : vector<8x128xf32>
    %61 = arith.negf %60 : vector<8x128xf32>
    %62 = math.exp %61 : vector<8x128xf32>
    %cst_27 = arith.constant 1.000000e+00 : f32
    %63 = vector.broadcast %cst_27 : f32 to vector<8x128xf32>
    %64 = arith.addf %63, %62 : vector<8x128xf32>
    %65 = arith.divf %63, %64 : vector<8x128xf32>
    %66 = vector.extract_strided_slice %65 {offsets = [0, 0], sizes = [8, 32], strides = [1, 1]} : vector<8x128xf32> to vector<8x32xf32>
    %67 = vector.extract_strided_slice %65 {offsets = [0, 32], sizes = [8, 32], strides = [1, 1]} : vector<8x128xf32> to vector<8x32xf32>
    %68 = vector.extract_strided_slice %65 {offsets = [0, 64], sizes = [8, 32], strides = [1, 1]} : vector<8x128xf32> to vector<8x32xf32>
    %cst_28 = arith.constant 2.000000e+00 : f32
    %69 = vector.broadcast %cst_28 : f32 to vector<8x32xf32>
    %70 = arith.mulf %69, %68 : vector<8x32xf32>
    %cst_29 = arith.constant 1.000000e+00 : f32
    %71 = vector.broadcast %cst_29 : f32 to vector<8x32xf32>
    %72 = arith.subf %70, %71 : vector<8x32xf32>
    %73 = vector.extract_strided_slice %65 {offsets = [0, 96], sizes = [8, 32], strides = [1, 1]} : vector<8x128xf32> to vector<8x32xf32>
    %74 = arith.mulf %67, %49 : vector<8x32xf32>
    %75 = arith.mulf %66, %72 : vector<8x32xf32>
    %76 = arith.addf %74, %75 : vector<8x32xf32>
    %77 = math.tanh %76 : vector<8x32xf32>
    %78 = arith.mulf %73, %77 : vector<8x32xf32>
    %79 = arith.index_cast %c1_i32 : i32 to index
    %c0_30 = arith.constant 0 : index
    %c0_31 = arith.constant 0 : index
    %80 = vector.load %arg13[%79, %c0_30, %c0_31] : memref<8x8x32xf32, #tpu.memory_space<vmem>>, vector<1x8x32xf32>
    %81 = vector.shape_cast %80 : vector<1x8x32xf32> to vector<8x32xf32>
    %82 = vector.shape_cast %78 : vector<8x32xf32> to vector<1x8x32xf32>
    tpu.vector_store %arg13[%79, %c0_30, %c0_31], %82 {strides = array<i32>} : memref<8x8x32xf32, #tpu.memory_space<vmem>>, vector<1x8x32xf32>,
    %c2_i32 = arith.constant 2 : i32
    %83 = arith.index_cast %c2_i32 : i32 to index
    %c0_32 = arith.constant 0 : index
    %c0_33 = arith.constant 0 : index
    %84 = vector.load %arg12[%83, %c0_32, %c0_33] : memref<8x8x128xf32, #tpu.memory_space<vmem>>, vector<1x8x128xf32>
    %85 = vector.shape_cast %84 : vector<1x8x128xf32> to vector<8x128xf32>
    %cst_34 = arith.constant dense<0.000000e+00> : vector<8x128xf32>
    %86 = tpu.matmul %78, %26, %cst_34 {dimension_numbers = #tpu.dot_dimension_numbers<[1], [0], [0], [1], [0, 0, 1, 1], [], []>} : vector<8x32xf32>, vector<32x128xf32>, vector<8x128xf32> -> vector<8x128xf32>
    %87 = arith.addf %85, %86 : vector<8x128xf32>
    %88 = arith.negf %87 : vector<8x128xf32>
    %89 = math.exp %88 : vector<8x128xf32>
    %cst_35 = arith.constant 1.000000e+00 : f32
    %90 = vector.broadcast %cst_35 : f32 to vector<8x128xf32>
    %91 = arith.addf %90, %89 : vector<8x128xf32>
    %92 = arith.divf %90, %91 : vector<8x128xf32>
    %93 = vector.extract_strided_slice %92 {offsets = [0, 0], sizes = [8, 32], strides = [1, 1]} : vector<8x128xf32> to vector<8x32xf32>
    %94 = vector.extract_strided_slice %92 {offsets = [0, 32], sizes = [8, 32], strides = [1, 1]} : vector<8x128xf32> to vector<8x32xf32>
    %95 = vector.extract_strided_slice %92 {offsets = [0, 64], sizes = [8, 32], strides = [1, 1]} : vector<8x128xf32> to vector<8x32xf32>
    %cst_36 = arith.constant 2.000000e+00 : f32
    %96 = vector.broadcast %cst_36 : f32 to vector<8x32xf32>
    %97 = arith.mulf %96, %95 : vector<8x32xf32>
    %cst_37 = arith.constant 1.000000e+00 : f32
    %98 = vector.broadcast %cst_37 : f32 to vector<8x32xf32>
    %99 = arith.subf %97, %98 : vector<8x32xf32>
    %100 = vector.extract_strided_slice %92 {offsets = [0, 96], sizes = [8, 32], strides = [1, 1]} : vector<8x128xf32> to vector<8x32xf32>
    %101 = arith.mulf %94, %76 : vector<8x32xf32>
    %102 = arith.mulf %93, %99 : vector<8x32xf32>
    %103 = arith.addf %101, %102 : vector<8x32xf32>
    %104 = math.tanh %103 : vector<8x32xf32>
    %105 = arith.mulf %100, %104 : vector<8x32xf32>
    %106 = arith.index_cast %c2_i32 : i32 to index
    %c0_38 = arith.constant 0 : index
    %c0_39 = arith.constant 0 : index
    %107 = vector.load %arg13[%106, %c0_38, %c0_39] : memref<8x8x32xf32, #tpu.memory_space<vmem>>, vector<1x8x32xf32>
    %108 = vector.shape_cast %107 : vector<1x8x32xf32> to vector<8x32xf32>
    %109 = vector.shape_cast %105 : vector<8x32xf32> to vector<1x8x32xf32>
    tpu.vector_store %arg13[%106, %c0_38, %c0_39], %109 {strides = array<i32>} : memref<8x8x32xf32, #tpu.memory_space<vmem>>, vector<1x8x32xf32>,
    %c3_i32 = arith.constant 3 : i32
    %110 = arith.index_cast %c3_i32 : i32 to index
    %c0_40 = arith.constant 0 : index
    %c0_41 = arith.constant 0 : index
    %111 = vector.load %arg12[%110, %c0_40, %c0_41] : memref<8x8x128xf32, #tpu.memory_space<vmem>>, vector<1x8x128xf32>
    %112 = vector.shape_cast %111 : vector<1x8x128xf32> to vector<8x128xf32>
    %cst_42 = arith.constant dense<0.000000e+00> : vector<8x128xf32>
    %113 = tpu.matmul %105, %26, %cst_42 {dimension_numbers = #tpu.dot_dimension_numbers<[1], [0], [0], [1], [0, 0, 1, 1], [], []>} : vector<8x32xf32>, vector<32x128xf32>, vector<8x128xf32> -> vector<8x128xf32>
    %114 = arith.addf %112, %113 : vector<8x128xf32>
    %115 = arith.negf %114 : vector<8x128xf32>
    %116 = math.exp %115 : vector<8x128xf32>
    %cst_43 = arith.constant 1.000000e+00 : f32
    %117 = vector.broadcast %cst_43 : f32 to vector<8x128xf32>
    %118 = arith.addf %117, %116 : vector<8x128xf32>
    %119 = arith.divf %117, %118 : vector<8x128xf32>
    %120 = vector.extract_strided_slice %119 {offsets = [0, 0], sizes = [8, 32], strides = [1, 1]} : vector<8x128xf32> to vector<8x32xf32>
    %121 = vector.extract_strided_slice %119 {offsets = [0, 32], sizes = [8, 32], strides = [1, 1]} : vector<8x128xf32> to vector<8x32xf32>
    %122 = vector.extract_strided_slice %119 {offsets = [0, 64], sizes = [8, 32], strides = [1, 1]} : vector<8x128xf32> to vector<8x32xf32>
    %cst_44 = arith.constant 2.000000e+00 : f32
    %123 = vector.broadcast %cst_44 : f32 to vector<8x32xf32>
    %124 = arith.mulf %123, %122 : vector<8x32xf32>
    %cst_45 = arith.constant 1.000000e+00 : f32
    %125 = vector.broadcast %cst_45 : f32 to vector<8x32xf32>
    %126 = arith.subf %124, %125 : vector<8x32xf32>
    %127 = vector.extract_strided_slice %119 {offsets = [0, 96], sizes = [8, 32], strides = [1, 1]} : vector<8x128xf32> to vector<8x32xf32>
    %128 = arith.mulf %121, %103 : vector<8x32xf32>
    %129 = arith.mulf %120, %126 : vector<8x32xf32>
    %130 = arith.addf %128, %129 : vector<8x32xf32>
    %131 = math.tanh %130 : vector<8x32xf32>
    %132 = arith.mulf %127, %131 : vector<8x32xf32>
    %133 = arith.index_cast %c3_i32 : i32 to index
    %c0_46 = arith.constant 0 : index
    %c0_47 = arith.constant 0 : index
    %134 = vector.load %arg13[%133, %c0_46, %c0_47] : memref<8x8x32xf32, #tpu.memory_space<vmem>>, vector<1x8x32xf32>
    %135 = vector.shape_cast %134 : vector<1x8x32xf32> to vector<8x32xf32>
    %136 = vector.shape_cast %132 : vector<8x32xf32> to vector<1x8x32xf32>
    tpu.vector_store %arg13[%133, %c0_46, %c0_47], %136 {strides = array<i32>} : memref<8x8x32xf32, #tpu.memory_space<vmem>>, vector<1x8x32xf32>,
    %c4_i32 = arith.constant 4 : i32
    %137 = arith.index_cast %c4_i32 : i32 to index
    %c0_48 = arith.constant 0 : index
    %c0_49 = arith.constant 0 : index
    %138 = vector.load %arg12[%137, %c0_48, %c0_49] : memref<8x8x128xf32, #tpu.memory_space<vmem>>, vector<1x8x128xf32>
    %139 = vector.shape_cast %138 : vector<1x8x128xf32> to vector<8x128xf32>
    %cst_50 = arith.constant dense<0.000000e+00> : vector<8x128xf32>
    %140 = tpu.matmul %132, %26, %cst_50 {dimension_numbers = #tpu.dot_dimension_numbers<[1], [0], [0], [1], [0, 0, 1, 1], [], []>} : vector<8x32xf32>, vector<32x128xf32>, vector<8x128xf32> -> vector<8x128xf32>
    %141 = arith.addf %139, %140 : vector<8x128xf32>
    %142 = arith.negf %141 : vector<8x128xf32>
    %143 = math.exp %142 : vector<8x128xf32>
    %cst_51 = arith.constant 1.000000e+00 : f32
    %144 = vector.broadcast %cst_51 : f32 to vector<8x128xf32>
    %145 = arith.addf %144, %143 : vector<8x128xf32>
    %146 = arith.divf %144, %145 : vector<8x128xf32>
    %147 = vector.extract_strided_slice %146 {offsets = [0, 0], sizes = [8, 32], strides = [1, 1]} : vector<8x128xf32> to vector<8x32xf32>
    %148 = vector.extract_strided_slice %146 {offsets = [0, 32], sizes = [8, 32], strides = [1, 1]} : vector<8x128xf32> to vector<8x32xf32>
    %149 = vector.extract_strided_slice %146 {offsets = [0, 64], sizes = [8, 32], strides = [1, 1]} : vector<8x128xf32> to vector<8x32xf32>
    %cst_52 = arith.constant 2.000000e+00 : f32
    %150 = vector.broadcast %cst_52 : f32 to vector<8x32xf32>
    %151 = arith.mulf %150, %149 : vector<8x32xf32>
    %cst_53 = arith.constant 1.000000e+00 : f32
    %152 = vector.broadcast %cst_53 : f32 to vector<8x32xf32>
    %153 = arith.subf %151, %152 : vector<8x32xf32>
    %154 = vector.extract_strided_slice %146 {offsets = [0, 96], sizes = [8, 32], strides = [1, 1]} : vector<8x128xf32> to vector<8x32xf32>
    %155 = arith.mulf %148, %130 : vector<8x32xf32>
    %156 = arith.mulf %147, %153 : vector<8x32xf32>
    %157 = arith.addf %155, %156 : vector<8x32xf32>
    %158 = math.tanh %157 : vector<8x32xf32>
    %159 = arith.mulf %154, %158 : vector<8x32xf32>
    %160 = arith.index_cast %c4_i32 : i32 to index
    %c0_54 = arith.constant 0 : index
    %c0_55 = arith.constant 0 : index
    %161 = vector.load %arg13[%160, %c0_54, %c0_55] : memref<8x8x32xf32, #tpu.memory_space<vmem>>, vector<1x8x32xf32>
    %162 = vector.shape_cast %161 : vector<1x8x32xf32> to vector<8x32xf32>
    %163 = vector.shape_cast %159 : vector<8x32xf32> to vector<1x8x32xf32>
    tpu.vector_store %arg13[%160, %c0_54, %c0_55], %163 {strides = array<i32>} : memref<8x8x32xf32, #tpu.memory_space<vmem>>, vector<1x8x32xf32>,
    %c5_i32 = arith.constant 5 : i32
    %164 = arith.index_cast %c5_i32 : i32 to index
    %c0_56 = arith.constant 0 : index
    %c0_57 = arith.constant 0 : index
    %165 = vector.load %arg12[%164, %c0_56, %c0_57] : memref<8x8x128xf32, #tpu.memory_space<vmem>>, vector<1x8x128xf32>
    %166 = vector.shape_cast %165 : vector<1x8x128xf32> to vector<8x128xf32>
    %cst_58 = arith.constant dense<0.000000e+00> : vector<8x128xf32>
    %167 = tpu.matmul %159, %26, %cst_58 {dimension_numbers = #tpu.dot_dimension_numbers<[1], [0], [0], [1], [0, 0, 1, 1], [], []>} : vector<8x32xf32>, vector<32x128xf32>, vector<8x128xf32> -> vector<8x128xf32>
    %168 = arith.addf %166, %167 : vector<8x128xf32>
    %169 = arith.negf %168 : vector<8x128xf32>
    %170 = math.exp %169 : vector<8x128xf32>
    %cst_59 = arith.constant 1.000000e+00 : f32
    %171 = vector.broadcast %cst_59 : f32 to vector<8x128xf32>
    %172 = arith.addf %171, %170 : vector<8x128xf32>
    %173 = arith.divf %171, %172 : vector<8x128xf32>
    %174 = vector.extract_strided_slice %173 {offsets = [0, 0], sizes = [8, 32], strides = [1, 1]} : vector<8x128xf32> to vector<8x32xf32>
    %175 = vector.extract_strided_slice %173 {offsets = [0, 32], sizes = [8, 32], strides = [1, 1]} : vector<8x128xf32> to vector<8x32xf32>
    %176 = vector.extract_strided_slice %173 {offsets = [0, 64], sizes = [8, 32], strides = [1, 1]} : vector<8x128xf32> to vector<8x32xf32>
    %cst_60 = arith.constant 2.000000e+00 : f32
    %177 = vector.broadcast %cst_60 : f32 to vector<8x32xf32>
    %178 = arith.mulf %177, %176 : vector<8x32xf32>
    %cst_61 = arith.constant 1.000000e+00 : f32
    %179 = vector.broadcast %cst_61 : f32 to vector<8x32xf32>
    %180 = arith.subf %178, %179 : vector<8x32xf32>
    %181 = vector.extract_strided_slice %173 {offsets = [0, 96], sizes = [8, 32], strides = [1, 1]} : vector<8x128xf32> to vector<8x32xf32>
    %182 = arith.mulf %175, %157 : vector<8x32xf32>
    %183 = arith.mulf %174, %180 : vector<8x32xf32>
    %184 = arith.addf %182, %183 : vector<8x32xf32>
    %185 = math.tanh %184 : vector<8x32xf32>
    %186 = arith.mulf %181, %185 : vector<8x32xf32>
    %187 = arith.index_cast %c5_i32 : i32 to index
    %c0_62 = arith.constant 0 : index
    %c0_63 = arith.constant 0 : index
    %188 = vector.load %arg13[%187, %c0_62, %c0_63] : memref<8x8x32xf32, #tpu.memory_space<vmem>>, vector<1x8x32xf32>
    %189 = vector.shape_cast %188 : vector<1x8x32xf32> to vector<8x32xf32>
    %190 = vector.shape_cast %186 : vector<8x32xf32> to vector<1x8x32xf32>
    tpu.vector_store %arg13[%187, %c0_62, %c0_63], %190 {strides = array<i32>} : memref<8x8x32xf32, #tpu.memory_space<vmem>>, vector<1x8x32xf32>,
    %c6_i32 = arith.constant 6 : i32
    %191 = arith.index_cast %c6_i32 : i32 to index
    %c0_64 = arith.constant 0 : index
    %c0_65 = arith.constant 0 : index
    %192 = vector.load %arg12[%191, %c0_64, %c0_65] : memref<8x8x128xf32, #tpu.memory_space<vmem>>, vector<1x8x128xf32>
    %193 = vector.shape_cast %192 : vector<1x8x128xf32> to vector<8x128xf32>
    %cst_66 = arith.constant dense<0.000000e+00> : vector<8x128xf32>
    %194 = tpu.matmul %186, %26, %cst_66 {dimension_numbers = #tpu.dot_dimension_numbers<[1], [0], [0], [1], [0, 0, 1, 1], [], []>} : vector<8x32xf32>, vector<32x128xf32>, vector<8x128xf32> -> vector<8x128xf32>
    %195 = arith.addf %193, %194 : vector<8x128xf32>
    %196 = arith.negf %195 : vector<8x128xf32>
    %197 = math.exp %196 : vector<8x128xf32>
    %cst_67 = arith.constant 1.000000e+00 : f32
    %198 = vector.broadcast %cst_67 : f32 to vector<8x128xf32>
    %199 = arith.addf %198, %197 : vector<8x128xf32>
    %200 = arith.divf %198, %199 : vector<8x128xf32>
    %201 = vector.extract_strided_slice %200 {offsets = [0, 0], sizes = [8, 32], strides = [1, 1]} : vector<8x128xf32> to vector<8x32xf32>
    %202 = vector.extract_strided_slice %200 {offsets = [0, 32], sizes = [8, 32], strides = [1, 1]} : vector<8x128xf32> to vector<8x32xf32>
    %203 = vector.extract_strided_slice %200 {offsets = [0, 64], sizes = [8, 32], strides = [1, 1]} : vector<8x128xf32> to vector<8x32xf32>
    %cst_68 = arith.constant 2.000000e+00 : f32
    %204 = vector.broadcast %cst_68 : f32 to vector<8x32xf32>
    %205 = arith.mulf %204, %203 : vector<8x32xf32>
    %cst_69 = arith.constant 1.000000e+00 : f32
    %206 = vector.broadcast %cst_69 : f32 to vector<8x32xf32>
    %207 = arith.subf %205, %206 : vector<8x32xf32>
    %208 = vector.extract_strided_slice %200 {offsets = [0, 96], sizes = [8, 32], strides = [1, 1]} : vector<8x128xf32> to vector<8x32xf32>
    %209 = arith.mulf %202, %184 : vector<8x32xf32>
    %210 = arith.mulf %201, %207 : vector<8x32xf32>
    %211 = arith.addf %209, %210 : vector<8x32xf32>
    %212 = math.tanh %211 : vector<8x32xf32>
    %213 = arith.mulf %208, %212 : vector<8x32xf32>
    %214 = arith.index_cast %c6_i32 : i32 to index
    %c0_70 = arith.constant 0 : index
    %c0_71 = arith.constant 0 : index
    %215 = vector.load %arg13[%214, %c0_70, %c0_71] : memref<8x8x32xf32, #tpu.memory_space<vmem>>, vector<1x8x32xf32>
    %216 = vector.shape_cast %215 : vector<1x8x32xf32> to vector<8x32xf32>
    %217 = vector.shape_cast %213 : vector<8x32xf32> to vector<1x8x32xf32>
    tpu.vector_store %arg13[%214, %c0_70, %c0_71], %217 {strides = array<i32>} : memref<8x8x32xf32, #tpu.memory_space<vmem>>, vector<1x8x32xf32>,
    %c7_i32 = arith.constant 7 : i32
    %218 = arith.index_cast %c7_i32 : i32 to index
    %c0_72 = arith.constant 0 : index
    %c0_73 = arith.constant 0 : index
    %219 = vector.load %arg12[%218, %c0_72, %c0_73] : memref<8x8x128xf32, #tpu.memory_space<vmem>>, vector<1x8x128xf32>
    %220 = vector.shape_cast %219 : vector<1x8x128xf32> to vector<8x128xf32>
    %cst_74 = arith.constant dense<0.000000e+00> : vector<8x128xf32>
    %221 = tpu.matmul %213, %26, %cst_74 {dimension_numbers = #tpu.dot_dimension_numbers<[1], [0], [0], [1], [0, 0, 1, 1], [], []>} : vector<8x32xf32>, vector<32x128xf32>, vector<8x128xf32> -> vector<8x128xf32>
    %222 = arith.addf %220, %221 : vector<8x128xf32>
    %223 = arith.negf %222 : vector<8x128xf32>
    %224 = math.exp %223 : vector<8x128xf32>
    %cst_75 = arith.constant 1.000000e+00 : f32
    %225 = vector.broadcast %cst_75 : f32 to vector<8x128xf32>
    %226 = arith.addf %225, %224 : vector<8x128xf32>
    %227 = arith.divf %225, %226 : vector<8x128xf32>
    %228 = vector.extract_strided_slice %227 {offsets = [0, 0], sizes = [8, 32], strides = [1, 1]} : vector<8x128xf32> to vector<8x32xf32>
    %229 = vector.extract_strided_slice %227 {offsets = [0, 32], sizes = [8, 32], strides = [1, 1]} : vector<8x128xf32> to vector<8x32xf32>
    %230 = vector.extract_strided_slice %227 {offsets = [0, 64], sizes = [8, 32], strides = [1, 1]} : vector<8x128xf32> to vector<8x32xf32>
    %cst_76 = arith.constant 2.000000e+00 : f32
    %231 = vector.broadcast %cst_76 : f32 to vector<8x32xf32>
    %232 = arith.mulf %231, %230 : vector<8x32xf32>
    %cst_77 = arith.constant 1.000000e+00 : f32
    %233 = vector.broadcast %cst_77 : f32 to vector<8x32xf32>
    %234 = arith.subf %232, %233 : vector<8x32xf32>
    %235 = vector.extract_strided_slice %227 {offsets = [0, 96], sizes = [8, 32], strides = [1, 1]} : vector<8x128xf32> to vector<8x32xf32>
    %236 = arith.mulf %229, %211 : vector<8x32xf32>
    %237 = arith.mulf %228, %234 : vector<8x32xf32>
    %238 = arith.addf %236, %237 : vector<8x32xf32>
    %239 = math.tanh %238 : vector<8x32xf32>
    %240 = arith.mulf %235, %239 : vector<8x32xf32>
    %241 = arith.index_cast %c7_i32 : i32 to index
    %c0_78 = arith.constant 0 : index
    %c0_79 = arith.constant 0 : index
    %242 = vector.load %arg13[%241, %c0_78, %c0_79] : memref<8x8x32xf32, #tpu.memory_space<vmem>>, vector<1x8x32xf32>
    %243 = vector.shape_cast %242 : vector<1x8x32xf32> to vector<8x32xf32>
    %244 = vector.shape_cast %240 : vector<8x32xf32> to vector<1x8x32xf32>
    tpu.vector_store %arg13[%241, %c0_78, %c0_79], %244 {strides = array<i32>} : memref<8x8x32xf32, #tpu.memory_space<vmem>>, vector<1x8x32xf32>,
    %c8_i32 = arith.constant 8 : i32
    %c0_80 = arith.constant 0 : index
    %c0_81 = arith.constant 0 : index
    %245 = vector.load %arg2[%c0_80, %c0_81] : memref<8x1xi32, #tpu.memory_space<vmem>>, vector<8x1xi32>
    %c0_82 = arith.constant 0 : index
    %246 = memref.load %arg3[%c0_82] : memref<1xi32, #tpu.memory_space<smem>>
    %247 = tpu.iota {dimensions = array<i32: 0>} : vector<8x8x1xi32>
    %248 = vector.shape_cast %245 : vector<8x1xi32> to vector<1x8x1xi32>
    %249 = vector.broadcast %248 : vector<1x8x1xi32> to vector<8x8x1xi32>
    %250 = arith.cmpi slt, %247, %249 : vector<8x8x1xi32>
    %c0_83 = arith.constant 0 : index
    %c0_84 = arith.constant 0 : index
    %c0_85 = arith.constant 0 : index
    %251 = vector.load %arg13[%c0_83, %c0_84, %c0_85] : memref<8x8x32xf32, #tpu.memory_space<vmem>>, vector<8x8x32xf32>
    %cst_86 = arith.constant 0.000000e+00 : f32
    %252 = vector.shape_cast %250 : vector<8x8x1xi1> to vector<8x8x1xi1>
    %253 = vector.broadcast %252 : vector<8x8x1xi1> to vector<8x8x32xi1>
    %254 = vector.broadcast %cst_86 : f32 to vector<8x8x32xf32>
    %255 = arith.select %253, %251, %254 : vector<8x8x32xi1>, vector<8x8x32xf32>
    %256 = vector.shape_cast %255 : vector<8x8x32xf32> to vector<64x32xf32>
    %c0_87 = arith.constant 0 : index
    %c0_88 = arith.constant 0 : index
    %257 = vector.load %arg7[%c0_87, %c0_88] : memref<32x16xf32, #tpu.memory_space<vmem>>, vector<32x16xf32>
    %cst_89 = arith.constant dense<0.000000e+00> : vector<64x16xf32>
    %258 = tpu.matmul %256, %257, %cst_89 {dimension_numbers = #tpu.dot_dimension_numbers<[1], [0], [0], [1], [0, 0, 1, 1], [], []>} : vector<64x32xf32>, vector<32x16xf32>, vector<64x16xf32> -> vector<64x16xf32>
    %c0_90 = arith.constant 0 : index
    %c0_91 = arith.constant 0 : index
    %259 = vector.load %arg8[%c0_90, %c0_91] : memref<1x16xf32, #tpu.memory_space<vmem>>, vector<1x16xf32>
    %260 = vector.broadcast %259 : vector<1x16xf32> to vector<64x16xf32>
    %261 = arith.addf %258, %260 : vector<64x16xf32>
    %262 = math.tanh %261 : vector<64x16xf32>
    %c0_92 = arith.constant 0 : index
    %c0_93 = arith.constant 0 : index
    %263 = vector.load %arg9[%c0_92, %c0_93] : memref<16x32xf32, #tpu.memory_space<vmem>>, vector<16x32xf32>
    %cst_94 = arith.constant dense<0.000000e+00> : vector<64x32xf32>
    %264 = tpu.matmul %262, %263, %cst_94 {dimension_numbers = #tpu.dot_dimension_numbers<[1], [0], [0], [1], [0, 0, 1, 1], [], []>} : vector<64x16xf32>, vector<16x32xf32>, vector<64x32xf32> -> vector<64x32xf32>
    %c0_95 = arith.constant 0 : index
    %c0_96 = arith.constant 0 : index
    %265 = vector.load %arg10[%c0_95, %c0_96] : memref<1x32xf32, #tpu.memory_space<vmem>>, vector<1x32xf32>
    %266 = vector.broadcast %265 : vector<1x32xf32> to vector<64x32xf32>
    %267 = arith.addf %264, %266 : vector<64x32xf32>
    %268 = math.tanh %267 : vector<64x32xf32>
    %269 = vector.shape_cast %268 : vector<64x32xf32> to vector<8x8x32xf32>
    %270 = vector.broadcast %246 : i32 to vector<8x8x1xi32>
    %271 = arith.cmpi slt, %247, %270 : vector<8x8x1xi32>
    %cst_97 = arith.constant 0.000000e+00 : f32
    %272 = vector.shape_cast %271 : vector<8x8x1xi1> to vector<8x8x1xi1>
    %273 = vector.broadcast %272 : vector<8x8x1xi1> to vector<8x8x32xi1>
    %274 = vector.broadcast %cst_97 : f32 to vector<8x8x32xf32>
    %275 = arith.select %273, %269, %274 : vector<8x8x32xi1>, vector<8x8x32xf32>
    %c0_98 = arith.constant 0 : index
    %c0_99 = arith.constant 0 : index
    %c0_100 = arith.constant 0 : index
    %276 = vector.load %arg11[%c0_98, %c0_99, %c0_100] : memref<8x8x32xf32, #tpu.memory_space<vmem>>, vector<8x8x32xf32>
    tpu.vector_store %arg11[%c0_98, %c0_99, %c0_100], %275 {strides = array<i32>} : memref<8x8x32xf32, #tpu.memory_space<vmem>>, vector<8x8x32xf32>,
    return
  }
}

</mosaic_0001>

<bundles_post_ra>
// kernel: tpu_custom_call.1
= control target key start
LH: loop header
LB: loop body
LE: loop exit
PB: predicated region body
PF: predicated region fallthrough
CT: control target
= control target key end

     0   :  { %v40_v1 = vlaneseq  ;;  %v1961_v3 = vmov 0.0   ;;  %vm1962_vm0 = vmmov 0   ;;  %s2347_s0 = inlined_call_operand.vmem [shape: f32[64,16], index: 0, kind: input, shape index: {}]   ;;  %s2348_s1 = inlined_call_operand.vmem [shape: f32[64,16], index: 1, kind: input, shape index: {}]   ;;  %s2349_s2 = inlined_call_operand.vmem [shape: s32[8,1], index: 2, kind: input, shape index: {}]   ;;  %s2350_s3 = inlined_call_operand.<no memory space> [shape: s32[1], index: 3, kind: input, shape index: {}]   ;;  %s2351_s4 = inlined_call_operand.vmem [shape: f32[16,128], index: 4, kind: input, shape index: {}]   ;;  %s2352_s5 = inlined_call_operand.vmem [shape: f32[1,128], index: 5, kind: input, shape index: {}]   ;;  %s2353_s6 = inlined_call_operand.vmem [shape: f32[32,128], index: 6, kind: input, shape index: {}]   ;;  %s2354_s7 = inlined_call_operand.vmem [shape: f32[32,16], index: 7, kind: input, shape index: {}]   ;;  %s2355_s8 = inlined_call_operand.vmem [shape: f32[1,16], index: 8, kind: input, shape index: {}]   ;;  %s2356_s9 = inlined_call_operand.vmem [shape: f32[16,32], index: 9, kind: input, shape index: {}]   ;;  %s2357_s10 = inlined_call_operand.vmem [shape: f32[1,32], index: 10, kind: input, shape index: {}]   ;;  %s2358_s11 = inlined_call_operand.hbm [shape: f32[8,8,32], index: 11, kind: output, shape index: {}]  }
   0x1   :  { %v143_v0 = vld [vmem:[%s2351_s4 + $0x8] sm:$0xff]  ;;  %v142_v2 = vld [vmem:[%s2351_s4] sm:$0xff]  ;;  %1708 = vmatprep.subr.mxu1 %v1961_v3  ;;  %1716 = vmatprep.mubr.msk.f32.mxu1 %vm1962_vm0, %v1961_v3 }
   0x2   :  { %1692 = vmatprep.subr.mxu0 %v143_v0  ;;  %v46_v4 = vld [vmem:[%s2347_s0] sm:$0xff]  ;;  %v41_v6 = vand.u32 127, %v40_v1  ;;  %v47_v9 = vld [vmem:[%s2347_s0 + $0x8] sm:$0xff] }
   0x3   :  { %v54_v5 = vld [vmem:[%s2348_s1] sm:$0xff]  ;;  %1693 = vmatpush3.msra.mxu0 %v143_v0  ;;  %v62_v7 = vmul.f32 %v46_v4, %v46_v4  ;;  %v55_v10 = vld [vmem:[%s2348_s1 + $0x8] sm:$0xff]  ;;  %v63_v11 = vmul.f32 %v47_v9, %v47_v9 }
   0x4   :  { %v70_v8 = vmul.f32 %v54_v5, %v54_v5  ;;  %1694 = vmatprep.subr.mxu0 %v142_v2  ;;  %v71_v12 = vmul.f32 %v55_v10, %v55_v10 }
   0x5   :  { %17 = vsyncpa [#allocation6], 0  ;;  %vm42_vm1 = vcmp.ge.s32.totalorder %v41_v6, 64  ;;  %vm43_vm2 = vcmp.lt.s32.totalorder %v41_v6, 96  ;;  %v300_v13 = vld [vmem:[%s2353_s6 + $0x18] sm:$0xff]  ;;  %1695 = vmatpush3.msra.mxu0 %v142_v2  ;;  %v299_v15 = vld [vmem:[%s2353_s6 + $0x10] sm:$0xff] }
   0x6   :  { %v78_v14 = vadd.f32 %v70_v8, %v62_v7  ;;  %vm44_vm3 = vmand %vm42_vm1, %vm43_vm2  ;;  %v79_v16 = vadd.f32 %v71_v12, %v63_v11  ;;  %1730 = vmatprep.subr.mxu0 %v1961_v3  ;;  %v1963_v17 = vmov 1.0   ;;  %v298_v19 = vld [vmem:[%s2353_s6 + $0x8] sm:$0xff]  ;;  %v297_v22 = vld [vmem:[%s2353_s6] sm:$0xff]  ;;  %vm151_vm7 = vcmask 130048   ;;  %s1964_s18 = smov 64  }
   0x7   :  { %v2058_v18 = vsel %vm44_vm3, 2.0, %v1963_v17  ;;  %v2110_v38 = vld [vmem:[%s2352_s5] ss:$0 sm:$0xff]  ;;  %s1965_s5 = smov 32   ;;  %vm306_vm9 = vcmask 261120   ;;  %v48_v11 = vld [vmem:[%s2347_s0 + $0x10] sm:$0xff] }
   0x8   :  { %1843 = vrsqrt.f32 %v78_v14  ;;  %v2064_v20 = vmul.f32 %v300_v13, %v2058_v18  ;;  %v2067_v21 = vmul.f32 %v299_v15, %v2058_v18  ;;  %v2074_v23 = vmul.f32 %v298_v19, %v2058_v18  ;;  %v56_v12 = vld [vmem:[%s2348_s1 + $0x10] sm:$0xff]  ;;  %v49_v13 = vld [vmem:[%s2347_s0 + $0x18] sm:$0xff]  ;;  %v50_v19 = vld [vmem:[%s2347_s0 + $0x20] sm:$0xff] }
   0x9   :  { %1845 = vrsqrt.f32 %v79_v16  ;;  %v2079_v24 = vmul.f32 %v297_v22, %v2058_v18  ;;  %vm88_vm4 = vcmp.eq.f32.partialorder %v78_v14, inf  ;;  %v91_v26 = vand.u32 2147483648, %v78_v14  ;;  %v58_v22 = vld [vmem:[%s2348_s1 + $0x20] sm:$0xff] }
   0xa   :  { %1709 = vmatpush3.msra.mxu1 %v2064_v20  ;;  %vm90_vm5 = vcmp.eq.f32.partialorder %v78_v14, 0.0  ;;  %vm95_vm6 = vcmp.eq.f32.partialorder %v79_v16, inf  ;;  %v98_v29 = vand.u32 2147483648, %v79_v16  ;;  %vm97_vm8 = vcmp.eq.f32.partialorder %v79_v16, 0.0 }
   0xb   :  { %1710 = vmatprep.subr.mxu1 %v1961_v3  ;;  %v72_v15 = vmul.f32 %v56_v12, %v56_v12  ;;  %v65_v17 = vmul.f32 %v49_v13, %v49_v13 }
   0xc   :  { %1711 = vmatpush3.msra.mxu1 %v2067_v21 }
   0xd   :  { %1712 = vmatprep.subr.mxu1 %v1961_v3 }
   0xe   :  { %1713 = vmatpush3.msra.mxu1 %v2074_v23 }
   0xf   :  { %1714 = vmatprep.subr.mxu1 %v1961_v3 }
  0x10   :  { %1715 = vmatpush3.msra.mxu1 %v2079_v24 }
  0x11   :  { %1717 = vmatmul.mubr.f32.vlgmr.msra.gmra.mxu1 %v1961_v3  ;;  %1719 = vmatprep.subr.mxu1 %v1961_v3 }
  0x12   :  { %1720 = vmatpush3.msra.mxu1 %v2064_v20  ;;  %1727 = vmatprep.mubr.msk.f32.mxu1 %vm1962_vm0, %v1961_v3 }
  0x13   :  { %1721 = vmatprep.subr.mxu1 %v1961_v3 }
  0x14   :  { %1722 = vmatpush3.msra.mxu1 %v2067_v21 }
  0x15   :  { %v1844_v25 = vpop.eup %1843  ;;  %1723 = vmatprep.subr.mxu1 %v1961_v3 }
  0x16   :  { %v1846_v27 = vpop.eup %1845  ;;  %v87_v28 = vmul.f32 %v1844_v25, %v78_v14  ;;  %1724 = vmatpush3.msra.mxu1 %v2074_v23 }
  0x17   :  { %v94_v30 = vmul.f32 %v1846_v27, %v79_v16  ;;  %1725 = vmatprep.subr.mxu1 %v1961_v3  ;;  %v74_v27 = vmul.f32 %v58_v22, %v58_v22 }
  0x18   :  { %v89_v31 = vsel %vm88_vm4, %v78_v14, %v87_v28  ;;  %1726 = vmatpush3.msra.mxu1 %v2079_v24  ;;  %v64_v14 = vmul.f32 %v48_v11, %v48_v11  ;;  %v51_v28 = vld [vmem:[%s2347_s0 + $0x28] sm:$0xff] }
  0x19   :  { %v92_v32 = vsel %vm90_vm5, %v91_v26, %v89_v31  ;;  %v96_v33 = vsel %vm95_vm6, %v79_v16, %v94_v30  ;;  %1741 = vmatprep.subr.mxu1 %v1961_v3  ;;  %v57_v16 = vld [vmem:[%s2348_s1 + $0x18] sm:$0xff]  ;;  %v66_v26 = vmul.f32 %v50_v19, %v50_v19  ;;  %v52_v30 = vld [vmem:[%s2347_s0 + $0x30] sm:$0xff] }
  0x1a   :  { %1696 = vmatprep.mubr.msk.f32.mxu0 %vm151_vm7, %v92_v32  ;;  %v99_v34 = vsel %vm97_vm8, %v98_v29, %v96_v33  ;;  %v73_v25 = vmul.f32 %v57_v16, %v57_v16  ;;  %v59_v29 = vld [vmem:[%s2348_s1 + $0x28] sm:$0xff]  ;;  %v80_v31 = vadd.f32 %v72_v15, %v64_v14  ;;  %v67_v32 = vmul.f32 %v51_v28, %v51_v28 }
  0x1b   :  { %1697 = vmatmul.mubr.msk.f32.vlgmr.msra.gmra.mxu0 %vm151_vm7, %v99_v34  ;;  %v75_v33 = vmul.f32 %v59_v29, %v59_v29  ;;  %v60_v34 = vld [vmem:[%s2348_s1 + $0x30] sm:$0xff] }
  0x1c   :  { %1731 = vmatpush3.msra.mxu0 %v2064_v20  ;;  %vm102_vm10 = vcmp.eq.f32.partialorder %v80_v31, inf  ;;  %vm104_vm11 = vcmp.eq.f32.partialorder %v80_v31, 0.0 }
  0x1d   :  { %1732 = vmatprep.subr.mxu0 %v1961_v3 }
  0x1e   :  { %1733 = vmatpush3.msra.mxu0 %v2067_v21 }
  0x1f   :  { %1734 = vmatprep.subr.mxu0 %v1961_v3 }
  0x20   :  { %1735 = vmatpush3.msra.mxu0 %v2074_v23 }
  0x21   :  { %1736 = vmatprep.subr.mxu0 %v1961_v3 }
  0x22   :  { %1737 = vmatpush3.msra.mxu0 %v2079_v24 }
  0x23   :  { %1752 = vmatprep.subr.mxu0 %v1961_v3 }
  0xd1   :  { %v376_v35 = vpop.f32.mrf.mxu1 }
  0xd3   :  { %v1718_v36 = vpop.f32.mrf.mxu1 }
  0xd4   :  { %v82_v36 = vadd.f32 %v74_v27, %v66_v26 }
  0xd6   :  { %vm116_vm14 = vcmp.eq.f32.partialorder %v82_v36, inf  ;;  %vm118_vm15 = vcmp.eq.f32.partialorder %v82_v36, 0.0 }
  0xdb   :  { %v1698_v37 = vpop.f32.mrf.mxu0 }
  0xdc   :  { %v248_v58 = vadd.f32 %v1698_v37, %v2110_v38  ;;  %v68_v37 = vmul.f32 %v52_v30, %v52_v30 }
  0xdd   :  { %v242_v39 = vpop.f32.mrf.mxu0 }
  0xde   :  { %v243_v40 = vadd.f32 %v2110_v38, %v242_v39  ;;  %v282_v59 = vmul.f32 %v248_v58, %v2058_v18  ;;  %v76_v39 = vmul.f32 %v60_v34, %v60_v34 }
  0xe0   :  { %v281_v41 = vmul.f32 %v243_v40, %v2058_v18  ;;  %v53_v40 = vld [vmem:[%s2347_s0 + $0x38] sm:$0xff] }
  0xe2   :  { %v380_v42 = vadd.f32 %v376_v35, %v281_v41  ;;  %v81_v35 = vadd.f32 %v73_v25, %v65_v17  ;;  %v61_v41 = vld [vmem:[%s2348_s1 + $0x38] sm:$0xff] }
  0xe4   :  { %v1579_v43 = vmul.f32 -1.442695, %v380_v42  ;;  %v83_v42 = vadd.f32 %v75_v33, %v67_v32  ;;  %vm109_vm12 = vcmp.eq.f32.partialorder %v81_v35, inf  ;;  %vm111_vm13 = vcmp.eq.f32.partialorder %v81_v35, 0.0 }
  0xe6   :  { %1847 = vpow2.f32 %v1579_v43  ;;  %v84_v43 = vadd.f32 %v76_v39, %v68_v37  ;;  %vm123_vm1 = vcmp.eq.f32.partialorder %v83_v42, inf  ;;  %vm125_vm2 = vcmp.eq.f32.partialorder %v83_v42, 0.0 }
  0xe8   :  { %vm130_vm3 = vcmp.eq.f32.partialorder %v84_v43, inf  ;;  %vm132_vm4 = vcmp.eq.f32.partialorder %v84_v43, 0.0 }
  0xf3   :  { %v1848_v44 = vpop.eup %1847 }
  0xf4   :  { %v384_v45 = vadd.f32 1.0, %v1848_v44  ;;  %v69_v44 = vmul.f32 %v53_v40, %v53_v40 }
  0xf6   :  { %1849 = vrcp.f32 %v384_v45  ;;  %v77_v45 = vmul.f32 %v61_v41, %v61_v41 }
 0x103   :  { %v1850_v46 = vpop.eup %1849 }
 0x104   :  { %v387_v47 = vmul.f32 2.0, %v1850_v46  ;;  %v389_v51 = vmul.f32 0.0, %v1850_v46 }
 0x106   :  { %v1580_v48 = vadd.f32 -1.0, %v387_v47  ;;  %v85_v47 = vadd.f32 %v77_v45, %v69_v44 }
 0x108   :  { %391 = vrot.lane.b32.xlu0 %v1580_v48, %s1964_s18  ;;  %vm137_vm5 = vcmp.eq.f32.partialorder %v85_v47, inf  ;;  %v140_v12 = vand.u32 2147483648, %v85_v47  ;;  %vm139_vm6 = vcmp.eq.f32.partialorder %v85_v47, 0.0 }
 0x17a   :  { %v392_v49 = vpop.permute.xlu0 %391 }
 0x17b   :  { %v394_v50 = vmul.f32 %v1850_v46, %v392_v49  ;;  %v105_v49 = vand.u32 2147483648, %v80_v31 }
 0x17d   :  { %396 = vrot.lane.b32.xlu0 %v394_v50, %s1965_s5 }
 0x1ef   :  { %v397_v52 = vpop.permute.xlu0 %396 }
 0x1f0   :  { %v399_v53 = vadd.f32 %v397_v52, %v389_v51  ;;  %v112_v52 = vand.u32 2147483648, %v81_v35 }
 0x1f2   :  { %1851 = vtanh.f32 %v399_v53 }
 0x1ff   :  { %v1852_v54 = vpop.eup %1851 }
 0x200   :  { %402 = vrot.lane.b32.xlu1 %v1852_v54, %s1964_s18 }
 0x272   :  { %v403_v55 = vpop.permute.xlu1 %402 }
 0x273   :  { %v405_v56 = vmul.f32 %v1850_v46, %v403_v55  ;;  %v119_v55 = vand.u32 2147483648, %v82_v36 }
 0x275   :  { %407 = vrot.lane.b32.xlu1 %v405_v56, %s1965_s5 }
 0x2e7   :  { %v408_v57 = vpop.permute.xlu1 %407 }
 0x2e8   :  { %410 = vst.msk [vmem:[#allocation3] sm:$0xff] %vm306_vm9, %v408_v57  ;;  %1728 = vmatmul.mubr.msk.f32.vlgmr.msra.gmra.mxu1 %vm306_vm9, %v408_v57 }
 0x2e9   :  { %1742 = vmatpush3.msra.mxu1 %v2064_v20  ;;  %1749 = vmatprep.mubr.msk.f32.mxu1 %vm1962_vm0, %v1961_v3 }
 0x2ea   :  { %1743 = vmatprep.subr.mxu1 %v1961_v3 }
 0x2eb   :  { %1744 = vmatpush3.msra.mxu1 %v2067_v21 }
 0x2ec   :  { %1745 = vmatprep.subr.mxu1 %v1961_v3 }
 0x2ed   :  { %1746 = vmatpush3.msra.mxu1 %v2074_v23 }
 0x2ee   :  { %1747 = vmatprep.subr.mxu1 %v1961_v3 }
 0x2ef   :  { %1748 = vmatpush3.msra.mxu1 %v2079_v24 }
 0x2f0   :  { %1763 = vmatprep.subr.mxu1 %v1961_v3 }
 0x3a8   :  { %v481_v60 = vpop.f32.mrf.mxu1 }
 0x3a9   :  { %v485_v61 = vadd.f32 %v481_v60, %v282_v59 }
 0x3aa   :  { %v1729_v62 = vpop.f32.mrf.mxu1 }
 0x3ab   :  { %v1582_v63 = vmul.f32 -1.442695, %v485_v61 }
 0x3ad   :  { %1853 = vpow2.f32 %v1582_v63  ;;  %v126_v63 = vand.u32 2147483648, %v83_v42 }
 0x3ba   :  { %v1854_v0 = vpop.eup %1853 }
 0x3bb   :  { %v489_v1 = vadd.f32 1.0, %v1854_v0 }
 0x3bd   :  { %1855 = vrcp.f32 %v489_v1 }
 0x3ca   :  { %v2132_v2 = vpop.eup %1855 }
 0x3cb   :  { %v492_v4 = vmul.f32 2.0, %v2132_v2  ;;  %v494_v8 = vmul.f32 %v2132_v2, %v399_v53 }
 0x3cd   :  { %v1583_v5 = vadd.f32 -1.0, %v492_v4 }
 0x3cf   :  { %496 = vrot.lane.b32.xlu0 %v1583_v5, %s1964_s18  ;;  %v133_v5 = vand.u32 2147483648, %v84_v43 }
 0x441   :  { %v497_v6 = vpop.permute.xlu0 %496 }
 0x442   :  { %v499_v7 = vmul.f32 %v2132_v2, %v497_v6 }
 0x444   :  { %501 = vrot.lane.b32.xlu1 %v499_v7, %s1965_s5 }
 0x4b6   :  { %v502_v9 = vpop.permute.xlu1 %501 }
 0x4b7   :  { %v2139_v10 = vadd.f32 %v502_v9, %v494_v8 }
 0x4b9   :  { %1857 = vtanh.f32 %v2139_v10 }
 0x4ba   :  { %1859 = vrsqrt.f32 %v80_v31 }
 0x4bb   :  { %1861 = vrsqrt.f32 %v81_v35 }
 0x4bc   :  { %1863 = vrsqrt.f32 %v82_v36 }
 0x4bd   :  { %1865 = vrsqrt.f32 %v83_v42 }
 0x4be   :  { %1867 = vrsqrt.f32 %v84_v43 }
 0x4bf   :  { %1869 = vrsqrt.f32 %v85_v47 }
 0x4c6   :  { %v1858_v46 = vpop.eup %1857 }
 0x4c7   :  { %507 = vrot.lane.b32.xlu0 %v1858_v46, %s1964_s18  ;;  %v1860_v48 = vpop.eup %1859 }
 0x4c8   :  { %v1862_v50 = vpop.eup %1861  ;;  %v101_v51 = vmul.f32 %v1860_v48, %v80_v31 }
 0x4c9   :  { %v1864_v53 = vpop.eup %1863  ;;  %v108_v54 = vmul.f32 %v1862_v50, %v81_v35 }
 0x4ca   :  { %v103_v56 = vsel %vm102_vm10, %v80_v31, %v101_v51  ;;  %v115_v57 = vmul.f32 %v1864_v53, %v82_v36  ;;  %v1866_v60 = vpop.eup %1865 }
 0x4cb   :  { %v106_v58 = vsel %vm104_vm11, %v105_v49, %v103_v56  ;;  %v110_v59 = vsel %vm109_vm12, %v81_v35, %v108_v54  ;;  %v1868_v0 = vpop.eup %1867  ;;  %v122_v4 = vmul.f32 %v1866_v60, %v83_v42 }
 0x4cc   :  { %1699 = vmatprep.mubr.msk.f32.mxu0 %vm151_vm7, %v106_v58  ;;  %v113_v61 = vsel %vm111_vm13, %v112_v52, %v110_v59  ;;  %v117_v62 = vsel %vm116_vm14, %v82_v36, %v115_v57  ;;  %v129_v6 = vmul.f32 %v1868_v0, %v84_v43  ;;  %v1870_v8 = vpop.eup %1869 }
 0x4cd   :  { %1700 = vmatmul.mubr.msk.f32.gmra.mxu0 %vm151_vm7, %v113_v61  ;;  %v120_v1 = vsel %vm118_vm15, %v119_v55, %v117_v62  ;;  %v124_v7 = vsel %vm123_vm1, %v83_v42, %v122_v4  ;;  %v136_v14 = vmul.f32 %v1870_v8, %v85_v47 }
 0x4ce   :  { %1702 = vmatprep.mubr.msk.f32.mxu0 %vm151_vm7, %v120_v1  ;;  %v127_v9 = vsel %vm125_vm2, %v126_v63, %v124_v7  ;;  %v131_v11 = vsel %vm130_vm3, %v84_v43, %v129_v6 }
 0x4cf   :  { %v134_v13 = vsel %vm132_vm4, %v133_v5, %v131_v11  ;;  %v138_v15 = vsel %vm137_vm5, %v85_v47, %v136_v14 }
 0x4d0   :  { %v141_v16 = vsel %vm139_vm6, %v140_v12, %v138_v15 }
 0x4d1   :  { %1703 = vmatmul.mubr.msk.f32.gmra.mxu0 %vm151_vm7, %v127_v9 }
 0x4d2   :  { %1705 = vmatprep.mubr.msk.f32.mxu0 %vm151_vm7, %v134_v13 }
 0x4d5   :  { %1706 = vmatmul.mubr.msk.f32.gmra.mxu0 %vm151_vm7, %v141_v16 }
 0x4d6   :  { %1738 = vmatprep.mubr.msk.f32.mxu0 %vm1962_vm0, %v1961_v3 }
 0x539   :  { %v508_v17 = vpop.permute.xlu0 %507 }
 0x53a   :  { %v510_v19 = vmul.f32 %v2132_v2, %v508_v17 }
 0x53c   :  { %512 = vrot.lane.b32.xlu1 %v510_v19, %s1965_s5 }
 0x58d   :  { %v1701_v2 = vpop.f32.mrf.mxu0 }
 0x58f   :  { %v252_v25 = vpop.f32.mrf.mxu0 }
 0x590   :  { %v253_v29 = vadd.f32 %v2110_v38, %v252_v25 }
 0x591   :  { %v2202_v26 = vpop.f32.mrf.mxu0 }
 0x592   :  { %v283_v31 = vmul.f32 %v253_v29, %v2058_v18 }
 0x593   :  { %v2204_v27 = vpop.f32.mrf.mxu0 }
 0x594   :  { %v263_v8 = vadd.f32 %v2110_v38, %v2204_v27 }
 0x595   :  { %v2206_v28 = vpop.f32.mrf.mxu0 }
 0x596   :  { %v285_v9 = vmul.f32 %v263_v8, %v2058_v18 }
 0x597   :  { %v2209_v30 = vpop.f32.mrf.mxu0 }
 0x5ae   :  { %v513_v22 = vpop.permute.xlu1 %512 }
 0x5af   :  { %516 = vst.msk [vmem:[#allocation3 + $0x8] sm:$0xff] %vm306_vm9, %v513_v22  ;;  %1739 = vmatmul.mubr.msk.f32.vlgmr.msra.gmra.mxu0 %vm306_vm9, %v513_v22 }
 0x5b0   :  { %1753 = vmatpush3.msra.mxu0 %v2064_v20  ;;  %1760 = vmatprep.mubr.msk.f32.mxu0 %vm1962_vm0, %v1961_v3 }
 0x5b1   :  { %1754 = vmatprep.subr.mxu0 %v1961_v3 }
 0x5b2   :  { %1755 = vmatpush3.msra.mxu0 %v2067_v21 }
 0x5b3   :  { %1756 = vmatprep.subr.mxu0 %v1961_v3 }
 0x5b4   :  { %1757 = vmatpush3.msra.mxu0 %v2074_v23 }
 0x5b5   :  { %1758 = vmatprep.subr.mxu0 %v1961_v3 }
 0x5b6   :  { %1759 = vmatpush3.msra.mxu0 %v2079_v24 }
 0x5b7   :  { %1774 = vmatprep.subr.mxu0 %v1961_v3 }
 0x66f   :  { %v587_v32 = vpop.f32.mrf.mxu0 }
 0x670   :  { %v591_v33 = vadd.f32 %v587_v32, %v283_v31 }
 0x671   :  { %v1740_v34 = vpop.f32.mrf.mxu0 }
 0x672   :  { %v1585_v35 = vmul.f32 -1.442695, %v591_v33 }
 0x674   :  { %1871 = vpow2.f32 %v1585_v35 }
 0x681   :  { %v1872_v36 = vpop.eup %1871 }
 0x682   :  { %v595_v37 = vadd.f32 1.0, %v1872_v36  ;;  %v268_v36 = vadd.f32 %v2202_v26, %v2110_v38 }
 0x684   :  { %1873 = vrcp.f32 %v595_v37 }
 0x691   :  { %v1874_v39 = vpop.eup %1873 }
 0x692   :  { %v598_v40 = vmul.f32 2.0, %v1874_v39  ;;  %v600_v44 = vmul.f32 %v1874_v39, %v2139_v10  ;;  %v258_v10 = vadd.f32 %v1701_v2, %v2110_v38 }
 0x694   :  { %v1586_v41 = vadd.f32 -1.0, %v598_v40  ;;  %v284_v51 = vmul.f32 %v258_v10, %v2058_v18  ;;  %v273_v10 = vadd.f32 %v2110_v38, %v2209_v30 }
 0x696   :  { %602 = vrot.lane.b32.xlu0 %v1586_v41, %s1964_s18 }
 0x708   :  { %v603_v42 = vpop.permute.xlu0 %602 }
 0x709   :  { %v605_v43 = vmul.f32 %v1874_v39, %v603_v42 }
 0x70b   :  { %607 = vrot.lane.b32.xlu1 %v605_v43, %s1965_s5 }
 0x77d   :  { %v608_v45 = vpop.permute.xlu1 %607 }
 0x77e   :  { %v610_v46 = vadd.f32 %v608_v45, %v600_v44 }
 0x780   :  { %1875 = vtanh.f32 %v610_v46 }
 0x78d   :  { %v1876_v47 = vpop.eup %1875 }
 0x78e   :  { %613 = vrot.lane.b32.xlu0 %v1876_v47, %s1964_s18 }
 0x800   :  { %v614_v48 = vpop.permute.xlu0 %613 }
 0x801   :  { %v616_v49 = vmul.f32 %v1874_v39, %v614_v48 }
 0x803   :  { %618 = vrot.lane.b32.xlu1 %v616_v49, %s1965_s5 }
 0x875   :  { %v619_v50 = vpop.permute.xlu1 %618 }
 0x876   :  { %622 = vst.msk [vmem:[#allocation3 + $0x10] sm:$0xff] %vm306_vm9, %v619_v50  ;;  %1750 = vmatmul.mubr.msk.f32.vlgmr.msra.gmra.mxu1 %vm306_vm9, %v619_v50 }
 0x877   :  { %1764 = vmatpush3.msra.mxu1 %v2064_v20  ;;  %1771 = vmatprep.mubr.msk.f32.mxu1 %vm1962_vm0, %v1961_v3 }
 0x878   :  { %1765 = vmatprep.subr.mxu1 %v1961_v3 }
 0x879   :  { %1766 = vmatpush3.msra.mxu1 %v2067_v21 }
 0x87a   :  { %1767 = vmatprep.subr.mxu1 %v1961_v3 }
 0x87b   :  { %1768 = vmatpush3.msra.mxu1 %v2074_v23 }
 0x87c   :  { %1769 = vmatprep.subr.mxu1 %v1961_v3 }
 0x87d   :  { %1770 = vmatpush3.msra.mxu1 %v2079_v24 }
 0x87e   :  { %1785 = vmatprep.subr.mxu1 %v1961_v3 }
 0x936   :  { %v693_v52 = vpop.f32.mrf.mxu1 }
 0x937   :  { %v697_v53 = vadd.f32 %v693_v52, %v284_v51  ;;  %v287_v51 = vmul.f32 %v273_v10, %v2058_v18 }
 0x938   :  { %v1751_v54 = vpop.f32.mrf.mxu1 }
 0x939   :  { %v1588_v55 = vmul.f32 -1.442695, %v697_v53 }
 0x93b   :  { %1877 = vpow2.f32 %v1588_v55 }
 0x948   :  { %v1878_v56 = vpop.eup %1877 }
 0x949   :  { %v701_v57 = vadd.f32 1.0, %v1878_v56 }
 0x94b   :  { %1879 = vrcp.f32 %v701_v57 }
 0x958   :  { %v1880_v58 = vpop.eup %1879 }
 0x959   :  { %v704_v59 = vmul.f32 2.0, %v1880_v58  ;;  %v706_v63 = vmul.f32 %v1880_v58, %v610_v46 }
 0x95b   :  { %v1589_v60 = vadd.f32 -1.0, %v704_v59 }
 0x95d   :  { %708 = vrot.lane.b32.xlu0 %v1589_v60, %s1964_s18 }
 0x9cf   :  { %v709_v61 = vpop.permute.xlu0 %708 }
 0x9d0   :  { %v711_v62 = vmul.f32 %v1880_v58, %v709_v61 }
 0x9d2   :  { %713 = vrot.lane.b32.xlu1 %v711_v62, %s1965_s5 }
 0xa44   :  { %v714_v0 = vpop.permute.xlu1 %713 }
 0xa45   :  { %v716_v1 = vadd.f32 %v714_v0, %v706_v63 }
 0xa47   :  { %1881 = vtanh.f32 %v716_v1 }
 0xa54   :  { %v1882_v4 = vpop.eup %1881 }
 0xa55   :  { %719 = vrot.lane.b32.xlu0 %v1882_v4, %s1964_s18 }
 0xac7   :  { %v720_v5 = vpop.permute.xlu0 %719 }
 0xac8   :  { %v722_v6 = vmul.f32 %v1880_v58, %v720_v5 }
 0xaca   :  { %724 = vrot.lane.b32.xlu1 %v722_v6, %s1965_s5 }
 0xb3c   :  { %v725_v7 = vpop.permute.xlu1 %724 }
 0xb3d   :  { %728 = vst.msk [vmem:[#allocation3 + $0x18] sm:$0xff] %vm306_vm9, %v725_v7  ;;  %1761 = vmatmul.mubr.msk.f32.vlgmr.msra.gmra.mxu0 %vm306_vm9, %v725_v7  ;;  %v278_v7 = vadd.f32 %v2206_v28, %v2110_v38 }
 0xb3e   :  { %1775 = vmatpush3.msra.mxu0 %v2064_v20  ;;  %1782 = vmatprep.mubr.msk.f32.mxu0 %vm1962_vm0, %v1961_v3 }
 0xb3f   :  { %1776 = vmatprep.subr.mxu0 %v1961_v3  ;;  %v288_v8 = vmul.f32 %v278_v7, %v2058_v18 }
 0xb40   :  { %1777 = vmatpush3.msra.mxu0 %v2067_v21 }
 0xb41   :  { %1778 = vmatprep.subr.mxu0 %v1961_v3 }
 0xb42   :  { %1779 = vmatpush3.msra.mxu0 %v2074_v23 }
 0xb43   :  { %1780 = vmatprep.subr.mxu0 %v1961_v3 }
 0xb44   :  { %1781 = vmatpush3.msra.mxu0 %v2079_v24 }
 0xbfd   :  { %v799_v11 = vpop.f32.mrf.mxu0 }
 0xbfe   :  { %v803_v12 = vadd.f32 %v799_v11, %v285_v9 }
 0xbff   :  { %v1762_v13 = vpop.f32.mrf.mxu0 }
 0xc00   :  { %v1591_v14 = vmul.f32 -1.442695, %v803_v12 }
 0xc02   :  { %1883 = vpow2.f32 %v1591_v14 }
 0xc0f   :  { %v1884_v15 = vpop.eup %1883 }
 0xc10   :  { %v807_v16 = vadd.f32 1.0, %v1884_v15 }
 0xc12   :  { %1885 = vrcp.f32 %v807_v16  ;;  %v1966_v16 = vmov 0  }
 0xc13   :  { %1841 = vset.pattern.permute.xlu1 %v1966_v16  ;;  %1842 = vset.pattern.permute.xlu0 %v1966_v16 }
 0xc1f   :  { %v1886_v17 = vpop.eup %1885 }
 0xc20   :  { %v810_v19 = vmul.f32 2.0, %v1886_v17  ;;  %v812_v27 = vmul.f32 %v1886_v17, %v716_v1 }
 0xc22   :  { %v1592_v22 = vadd.f32 -1.0, %v810_v19 }
 0xc24   :  { %814 = vrot.lane.b32.xlu0 %v1592_v22, %s1964_s18 }
 0xc96   :  { %v815_v2 = vpop.permute.xlu0 %814 }
 0xc97   :  { %v817_v25 = vmul.f32 %v1886_v17, %v815_v2 }
 0xc99   :  { %819 = vrot.lane.b32.xlu1 %v817_v25, %s1965_s5 }
 0xd0b   :  { %v820_v29 = vpop.permute.xlu1 %819 }
 0xd0c   :  { %v822_v31 = vadd.f32 %v820_v29, %v812_v27 }
 0xd0e   :  { %1887 = vtanh.f32 %v822_v31 }
 0xd1b   :  { %v1888_v32 = vpop.eup %1887 }
 0xd1c   :  { %825 = vrot.lane.b32.xlu0 %v1888_v32, %s1964_s18 }
 0xd8e   :  { %v826_v33 = vpop.permute.xlu0 %825 }
 0xd8f   :  { %v828_v34 = vmul.f32 %v1886_v17, %v826_v33 }
 0xd91   :  { %830 = vrot.lane.b32.xlu1 %v828_v34, %s1965_s5 }
 0xe03   :  { %v831_v35 = vpop.permute.xlu1 %830 }
 0xe04   :  { %834 = vst.msk [vmem:[#allocation3 + $0x20] sm:$0xff] %vm306_vm9, %v831_v35  ;;  %1772 = vmatmul.mubr.msk.f32.vlgmr.msra.gmra.mxu1 %vm306_vm9, %v831_v35  ;;  %v1222_v35 = vld [vmem:[%s2354_s7 + $0x18] sm:$0xff] }
 0xe05   :  { %1786 = vmatpush3.msra.mxu1 %v2064_v20  ;;  %1793 = vmatprep.mubr.msk.f32.mxu1 %vm1962_vm0, %v1961_v3  ;;  %v286_v20 = vmul.f32 %v268_v36, %v2058_v18  ;;  %v1153_v18 = vld [vmem:[%s2349_s2] sm:$0xff]  ;;  %v1221_v36 = vld [vmem:[%s2354_s7 + $0x10] sm:$0xff] }
 0xe06   :  { %1787 = vmatprep.subr.mxu1 %v1961_v3  ;;  %vm1155_vm0 = vcmp.gt.s32.totalorder %v1153_v18, 0  ;;  %vm1157_vm8 = vcmp.gt.s32.totalorder %v1153_v18, 2  ;;  %vm1158_vm10 = vcmp.gt.s32.totalorder %v1153_v18, 3  ;;  %vm1160_vm11 = vcmp.gt.s32.totalorder %v1153_v18, 5  ;;  %1796 = vmatprep.subr.mxu0 %v1222_v35 }
 0xe07   :  { %1788 = vmatpush3.msra.mxu1 %v2067_v21  ;;  %v1171_v2 = vsel %vm1155_vm0, 1, %v1966_v16  ;;  %v1173_v25 = vsel %vm1157_vm8, 1, %v1966_v16  ;;  %v1174_v27 = vsel %vm1158_vm10, 1, %v1966_v16  ;;  %v1176_v29 = vsel %vm1160_vm11, 1, %v1966_v16 }
 0xe08   :  { %1789 = vmatprep.subr.mxu1 %v1961_v3  ;;  %vm1161_vm12 = vcmp.gt.s32.totalorder %v1153_v18, 6  ;;  %vm1156_vm14 = vcmp.gt.s32.totalorder %v1153_v18, 1  ;;  %vm1159_vm15 = vcmp.gt.s32.totalorder %v1153_v18, 4  ;;  %vm1162_vm1 = vcmp.gt.s32.totalorder %v1153_v18, 7 }
 0xe09   :  { %1790 = vmatpush3.msra.mxu1 %v2074_v23 }
 0xe0a   :  { %1791 = vmatprep.subr.mxu1 %v1961_v3 }
 0xe0b   :  { %1792 = vmatpush3.msra.mxu1 %v2079_v24 }
 0xec4   :  { %v905_v37 = vpop.f32.mrf.mxu1 }
 0xec5   :  { %v909_v39 = vadd.f32 %v905_v37, %v286_v20  ;;  %v1220_v20 = vld [vmem:[%s2354_s7 + $0x8] sm:$0xff] }
 0xec6   :  { %v1773_v40 = vpop.f32.mrf.mxu1 }
 0xec7   :  { %v1594_v41 = vmul.f32 -1.442695, %v909_v39  ;;  %v1163_v39 = vld [vmem:[#allocation3] sm:$0xff] }
 0xec9   :  { %1889 = vpow2.f32 %v1594_v41 }
 0xed6   :  { %v1890_v42 = vpop.eup %1889 }
 0xed7   :  { %v913_v21 = vadd.f32 1.0, %v1890_v42  ;;  %v1219_v42 = vld [vmem:[%s2354_s7] sm:$0xff] }
 0xed9   :  { %1891 = vrcp.f32 %v913_v21  ;;  %v1172_v21 = vsel %vm1156_vm14, 1, %v1966_v16 }
 0xee6   :  { %v1892_v43 = vpop.eup %1891 }
 0xee7   :  { %v916_v44 = vmul.f32 2.0, %v1892_v43  ;;  %v918_v26 = vmul.f32 %v1892_v43, %v822_v31  ;;  %v1177_v31 = vsel %vm1161_vm12, 1, %v1966_v16 }
 0xee9   :  { %v1595_v23 = vadd.f32 -1.0, %v916_v44 }
 0xeeb   :  { %920 = vrot.lane.b32.xlu0 %v1595_v23, %s1964_s18 }
 0xf5d   :  { %v921_v3 = vpop.permute.xlu0 %920 }
 0xf5e   :  { %v923_v24 = vmul.f32 %v1892_v43, %v921_v3 }
 0xf60   :  { %925 = vrot.lane.b32.xlu1 %v923_v24, %s1965_s5  ;;  %v1178_v24 = vsel %vm1162_vm1, 1, %v1966_v16 }
 0xfd2   :  { %v926_v45 = vpop.permute.xlu1 %925 }
 0xfd3   :  { %v928_v46 = vadd.f32 %v926_v45, %v918_v26 }
 0xfd5   :  { %1893 = vtanh.f32 %v928_v46 }
 0xfe2   :  { %v1894_v47 = vpop.eup %1893 }
 0xfe3   :  { %931 = vrot.lane.b32.xlu0 %v1894_v47, %s1964_s18  ;;  %v1164_v47 = vld [vmem:[#allocation3 + $0x8] sm:$0xff] }
0x1055   :  { %v932_v48 = vpop.permute.xlu0 %931 }
0x1056   :  { %v934_v49 = vmul.f32 %v1892_v43, %v932_v48  ;;  %v1175_v43 = vsel %vm1159_vm15, 1, %v1966_v16  ;;  %v1165_v48 = vld [vmem:[#allocation3 + $0x10] sm:$0xff] }
0x1058   :  { %936 = vrot.lane.b32.xlu1 %v934_v49, %s1965_s5 }
0x10ca   :  { %v937_v50 = vpop.permute.xlu1 %936 }
0x10cb   :  { %940 = vst.msk [vmem:[#allocation3 + $0x28] sm:$0xff] %vm306_vm9, %v937_v50  ;;  %1783 = vmatmul.mubr.msk.f32.vlgmr.msra.gmra.mxu0 %vm306_vm9, %v937_v50 }
0x10cc   :  { %1797 = vmatpush3.msra.mxu0 %v1222_v35 }
0x10cd   :  { %1798 = vmatprep.subr.mxu0 %v1221_v36 }
0x10ce   :  { %1799 = vmatpush3.msra.mxu0 %v1221_v36 }
0x10cf   :  { %1800 = vmatprep.subr.mxu0 %v1220_v20 }
0x10d0   :  { %1801 = vmatpush3.msra.mxu0 %v1220_v20 }
0x10d1   :  { %1802 = vmatprep.subr.mxu0 %v1219_v42 }
0x10d2   :  { %1803 = vmatpush3.msra.mxu0 %v1219_v42 }
0x118b   :  { %v1011_v52 = vpop.f32.mrf.mxu0 }
0x118c   :  { %v1015_v53 = vadd.f32 %v1011_v52, %v287_v51  ;;  %v1166_v51 = vld [vmem:[#allocation3 + $0x18] sm:$0xff] }
0x118d   :  { %v1784_v54 = vpop.f32.mrf.mxu0 }
0x118e   :  { %v1597_v55 = vmul.f32 -1.442695, %v1015_v53  ;;  %v1167_v53 = vld [vmem:[#allocation3 + $0x20] sm:$0xff] }
0x1190   :  { %1895 = vpow2.f32 %v1597_v55 }
0x119d   :  { %v1896_v56 = vpop.eup %1895 }
0x119e   :  { %v1019_v57 = vadd.f32 1.0, %v1896_v56  ;;  %v1168_v56 = vld [vmem:[#allocation3 + $0x28] sm:$0xff] }
0x11a0   :  { %1897 = vrcp.f32 %v1019_v57 }
0x11ad   :  { %v1898_v58 = vpop.eup %1897 }
0x11ae   :  { %v1022_v59 = vmul.f32 2.0, %v1898_v58  ;;  %v1024_v30 = vmul.f32 %v1898_v58, %v928_v46 }
0x11b0   :  { %v1598_v60 = vadd.f32 -1.0, %v1022_v59 }
0x11b2   :  { %1026 = vrot.lane.b32.xlu0 %v1598_v60, %s1964_s18  ;;  %v1368_v60 = vld [vmem:[%s2356_s9 + $0x8] sm:$0xff] }
0x11b3   :  { %1816 = vmatprep.subr.mxu1 %v1368_v60 }
0x1224   :  { %v1027_v61 = vpop.permute.xlu0 %1026 }
0x1225   :  { %v1029_v62 = vmul.f32 %v1898_v58, %v1027_v61  ;;  %v1367_v61 = vld [vmem:[%s2356_s9] sm:$0xff] }
0x1227   :  { %1031 = vrot.lane.b32.xlu1 %v1029_v62, %s1965_s5 }
0x1299   :  { %v1032_v63 = vpop.permute.xlu1 %1031 }
0x129a   :  { %v1034_v0 = vadd.f32 %v1032_v63, %v1024_v30 }
0x129c   :  { %1899 = vtanh.f32 %v1034_v0 }
0x12a9   :  { %v1900_v1 = vpop.eup %1899 }
0x12aa   :  { %1037 = vrot.lane.b32.xlu0 %v1900_v1, %s1964_s18  ;;  %v1602_v1 = vld [vmem:[%s2355_s8] ss:$0 sm:$0xff] }
0x131c   :  { %v1038_v4 = vpop.permute.xlu0 %1037 }
0x131d   :  { %v1040_v5 = vmul.f32 %v1898_v58, %v1038_v4 }
0x131f   :  { %1042 = vrot.lane.b32.xlu1 %v1040_v5, %s1965_s5 }
0x1391   :  { %v1043_v6 = vpop.permute.xlu1 %1042 }
0x1392   :  { %1046 = vst.msk [vmem:[#allocation3 + $0x30] sm:$0xff] %vm306_vm9, %v1043_v6  ;;  %1794 = vmatmul.mubr.msk.f32.vlgmr.msra.gmra.mxu1 %vm306_vm9, %v1043_v6 }
0x1393   :  { %1817 = vmatpush3.msra.mxu1 %v1368_v60 }
0x1394   :  { %1818 = vmatprep.subr.mxu1 %v1367_v61 }
0x1395   :  { %1819 = vmatpush3.msra.mxu1 %v1367_v61 }
0x1399   :  { %v1169_v58 = vld [vmem:[#allocation3 + $0x30] sm:$0xff] }
0x1452   :  { %v1117_v9 = vpop.f32.mrf.mxu1 }
0x1453   :  { %v1121_v11 = vadd.f32 %v1117_v9, %v288_v8 }
0x1454   :  { %v1795_v12 = vpop.f32.mrf.mxu1 }
0x1455   :  { %v1600_v13 = vmul.f32 -1.442695, %v1121_v11 }
0x1457   :  { %1901 = vpow2.f32 %v1600_v13 }
0x1464   :  { %v1902_v14 = vpop.eup %1901 }
0x1465   :  { %v1125_v15 = vadd.f32 1.0, %v1902_v14 }
0x1467   :  { %1903 = vrcp.f32 %v1125_v15 }
0x1474   :  { %v1904_v17 = vpop.eup %1903 }
0x1475   :  { %v1128_v19 = vmul.f32 2.0, %v1904_v17  ;;  %v1130_v32 = vmul.f32 %v1904_v17, %v1034_v0 }
0x1477   :  { %v1601_v22 = vadd.f32 -1.0, %v1128_v19 }
0x1479   :  { %1132 = vrot.lane.b32.xlu0 %v1601_v22, %s1964_s18 }
0x14eb   :  { %v1133_v38 = vpop.permute.xlu0 %1132 }
0x14ec   :  { %v1135_v28 = vmul.f32 %v1904_v17, %v1133_v38 }
0x14ee   :  { %1137 = vrot.lane.b32.xlu1 %v1135_v28, %s1965_s5 }
0x14f2   :  { %1180 = vperm.xlu1 %1841, %v1171_v2  }
0x14f6   :  { %1186 = vperm.xlu1 %1841, %v1173_v25  }
0x14fa   :  { %1189 = vperm.xlu1 %1841, %v1174_v27  }
0x14fe   :  { %1195 = vperm.xlu1 %1841, %v1176_v29  }
0x1502   :  { %1198 = vperm.xlu1 %1841, %v1177_v31  }
0x1560   :  { %v1138_v33 = vpop.permute.xlu1 %1137 }
0x1561   :  { %v1140_v34 = vadd.f32 %v1138_v33, %v1130_v32  ;;  %v1611_v33 = vld [vmem:[%s2357_s10] ss:$0 sm:$0xff] }
0x1563   :  { %1905 = vtanh.f32 %v1140_v34 }
0x156d   :  { %v1181_v37 = vpop.permute.xlu1 %1180 }
0x156e   :  { %vm1203_vm13 = vcmp.eq.s32.totalorder %v1181_v37, 1 }
0x156f   :  { %v1211_v40 = vsel %vm1203_vm13, %v1163_v39, 0.0 }
0x1570   :  { %v1906_v41 = vpop.eup %1905  ;;  %1804 = vmatprep.mubr.msk.f32.mxu0 %vm306_vm9, %v1211_v40 }
0x1571   :  { %1143 = vrot.lane.b32.xlu0 %v1906_v41, %s1964_s18  ;;  %v1187_v44 = vpop.permute.xlu1 %1186 }
0x1572   :  { %vm1205_vm2 = vcmp.eq.s32.totalorder %v1187_v44, 1  ;;  %v1513_v44 = vstv %s2350_s3  ;;  %s1967_s3 = smov [#allocation5]  }
0x1573   :  { %v1213_v50 = vsel %vm1205_vm2, %v1165_v48, 0.0  ;;  %vm1514_vm10 = vcmp.gt.s32.totalorder %v1513_v44, 0  ;;  %vm1517_vm11 = vcmp.gt.s32.totalorder %v1513_v44, 3  ;;  %vm1516_vm12 = vcmp.gt.s32.totalorder %v1513_v44, 2  ;;  %s1559_s10 = sshll.u32 %s1967_s3, 4  ;;  %s1560_s10 = int_to_ptr.vmem [resolvable:$true] %s1559_s10 }
0x1574   :  { %vm1519_vm13 = vcmp.gt.s32.totalorder %v1513_v44, 5  ;;  %vm1518_vm14 = vcmp.gt.s32.totalorder %v1513_v44, 4  ;;  %vm1521_vm15 = vcmp.gt.s32.totalorder %v1513_v44, 7  ;;  %vm1520_vm1 = vcmp.gt.s32.totalorder %v1513_v44, 6  ;;  %s1939_s15 = scalar_lea.vmem %s1560_s10, 1024  ;;  %p1944_p1 = scmp.lt.s32.totalorder %s1560_s10, %s1560_s10 }
0x1575   :  { %1183 = vperm.xlu0 %1842, %v1172_v21   ;;  %v1190_v26 = vpop.permute.xlu1 %1189  ;;  %p1940_p0 = scmp.ne.s32.totalorder %s1560_s10, %s1939_s15  ;;  %p1945_p2 = scmp.lt.s32.totalorder %s1939_s15, %s1939_s15 }
0x1576   :  { %vm1206_vm4 = vcmp.eq.s32.totalorder %v1190_v26, 1 }
0x1577   :  { %v1214_v54 = vsel %vm1206_vm4, %v1166_v51, 0.0  ;;  %p1946_p3 = por %p1945_p2, %p1944_p1 }
0x1579   :  { %1192 = vperm.xlu0 %1842, %v1175_v43   ;;  %v1196_v45 = vpop.permute.xlu1 %1195  ;;  %p1947_p4 = pnand %p1946_p3, %p1940_p0 }
0x157a   :  { %vm1208_vm6 = vcmp.eq.s32.totalorder %v1196_v45, 1 }
0x157b   :  { %v1216_v57 = vsel %vm1208_vm6, %v1168_v56, 0.0 }
0x157d   :  { %v1199_v52 = vpop.permute.xlu1 %1198 }
0x157e   :  { %vm1209_vm0 = vcmp.eq.s32.totalorder %v1199_v52, 1 }
0x157f   :  { %v1217_v59 = vsel %vm1209_vm0, %v1169_v58, 0.0 }
0x15e3   :  { %v1144_v23 = vpop.permute.xlu0 %1143 }
0x15e4   :  { %v1146_v3 = vmul.f32 %v1904_v17, %v1144_v23 }
0x15e6   :  { %1148 = vrot.lane.b32.xlu0 %v1146_v3, %s1965_s5 }
0x15ea   :  { %1201 = vperm.xlu0 %1842, %v1178_v24  }
0x15f0   :  { %v1184_v46 = vpop.permute.xlu0 %1183 }
0x15f1   :  { %vm1204_vm3 = vcmp.eq.s32.totalorder %v1184_v46, 1 }
0x15f2   :  { %v1212_v49 = vsel %vm1204_vm3, %v1164_v47, 0.0 }
0x15f3   :  { %1805 = vmatmul.mubr.msk.f32.vlgmr.msra.gmra.mxu0 %vm306_vm9, %v1212_v49 }
0x15f4   :  { %v1193_v10 = vpop.permute.xlu0 %1192  ;;  %1807 = vmatprep.mubr.msk.f32.mxu0 %vm306_vm9, %v1213_v50 }
0x15f5   :  { %vm1207_vm5 = vcmp.eq.s32.totalorder %v1193_v10, 1 }
0x15f6   :  { %v1215_v55 = vsel %vm1207_vm5, %v1167_v53, 0.0 }
0x15f7   :  { %1808 = vmatmul.mubr.msk.f32.gmra.mxu0 %vm306_vm9, %v1214_v54 }
0x15f8   :  { %1810 = vmatprep.mubr.msk.f32.mxu0 %vm306_vm9, %v1215_v55 }
0x15fb   :  { %1811 = vmatmul.mubr.msk.f32.gmra.mxu0 %vm306_vm9, %v1216_v57 }
0x15fc   :  { %1813 = vmatprep.mubr.msk.f32.mxu0 %vm306_vm9, %v1217_v59 }
0x1658   :  { %v1149_v62 = vpop.permute.xlu0 %1148 }
0x1659   :  { %1152 = vst.msk [vmem:[#allocation3 + $0x38] sm:$0xff] %vm306_vm9, %v1149_v62 }
0x1660   :  { %v1170_v63 = vld [vmem:[#allocation3 + $0x38] sm:$0xff] }
0x1665   :  { %v1202_v30 = vpop.permute.xlu0 %1201 }
0x1666   :  { %vm1210_vm8 = vcmp.eq.s32.totalorder %v1202_v30, 1 }
0x1667   :  { %v1218_v0 = vsel %vm1210_vm8, %v1170_v63, 0.0 }
0x1668   :  { %1814 = vmatmul.mubr.msk.f32.gmra.mxu0 %vm306_vm9, %v1218_v0 }
0x16b3   :  { %v1806_v4 = vpop.f32.mrf.mxu0 }
0x16b4   :  { %v1326_v5 = vadd.f32 %v1806_v4, %v1602_v1 }
0x16b5   :  { %v1320_v6 = vpop.f32.mrf.mxu0 }
0x16b6   :  { %v1321_v7 = vadd.f32 %v1602_v1, %v1320_v6 }
0x16b7   :  { %v1809_v8 = vpop.f32.mrf.mxu0 }
0x16b8   :  { %1907 = vtanh.f32 %v1321_v7  ;;  %v1336_v9 = vadd.f32 %v1809_v8, %v1602_v1 }
0x16b9   :  { %1909 = vtanh.f32 %v1326_v5  ;;  %v1330_v11 = vpop.f32.mrf.mxu0 }
0x16ba   :  { %v1331_v12 = vadd.f32 %v1602_v1, %v1330_v11 }
0x16bb   :  { %v1812_v13 = vpop.f32.mrf.mxu0 }
0x16bc   :  { %1911 = vtanh.f32 %v1331_v12  ;;  %v1346_v14 = vadd.f32 %v1812_v13, %v1602_v1 }
0x16bd   :  { %1913 = vtanh.f32 %v1336_v9  ;;  %v1340_v15 = vpop.f32.mrf.mxu0 }
0x16be   :  { %v1341_v16 = vadd.f32 %v1602_v1, %v1340_v15 }
0x16c0   :  { %1915 = vtanh.f32 %v1341_v16 }
0x16c1   :  { %1917 = vtanh.f32 %v1346_v14 }
0x16c5   :  { %v1908_v17 = vpop.eup %1907 }
0x16c6   :  { %v1910_v19 = vpop.eup %1909  ;;  %1820 = vmatprep.mubr.msk.f32.mxu1 %vm151_vm7, %v1908_v17 }
0x16c7   :  { %1821 = vmatmul.mubr.msk.f32.vlgmr.msra.gmra.mxu1 %vm151_vm7, %v1910_v19 }
0x16c9   :  { %v1912_v22 = vpop.eup %1911 }
0x16ca   :  { %v1914_v18 = vpop.eup %1913  ;;  %1823 = vmatprep.mubr.msk.f32.mxu1 %vm151_vm7, %v1912_v22 }
0x16cb   :  { %1824 = vmatmul.mubr.msk.f32.gmra.mxu1 %vm151_vm7, %v1914_v18 }
0x16cd   :  { %v1916_v38 = vpop.eup %1915 }
0x16ce   :  { %v1918_v28 = vpop.eup %1917  ;;  %1826 = vmatprep.mubr.msk.f32.mxu1 %vm151_vm7, %v1916_v38 }
0x16cf   :  { %1827 = vmatmul.mubr.msk.f32.gmra.mxu1 %vm151_vm7, %v1918_v28 }
0x1728   :  { %v1815_v2 = vpop.f32.mrf.mxu0 }
0x1729   :  { %v1356_v25 = vadd.f32 %v1815_v2, %v1602_v1 }
0x172a   :  { %v1350_v27 = vpop.f32.mrf.mxu0 }
0x172b   :  { %v1351_v29 = vadd.f32 %v1602_v1, %v1350_v27 }
0x172d   :  { %1919 = vtanh.f32 %v1351_v29 }
0x172e   :  { %1921 = vtanh.f32 %v1356_v25 }
0x173a   :  { %v1920_v31 = vpop.eup %1919 }
0x173b   :  { %v1922_v32 = vpop.eup %1921  ;;  %1829 = vmatprep.mubr.msk.f32.mxu1 %vm151_vm7, %v1920_v31 }
0x173c   :  { %1830 = vmatmul.mubr.msk.f32.gmra.mxu1 %vm151_vm7, %v1922_v32  ;;  %vm1515_vm7 = vcmp.gt.s32.totalorder %v1513_v44, 1 }
0x1787   :  { %v1822_v34 = vpop.f32.mrf.mxu1 }
0x1788   :  { %v1472_v35 = vadd.f32 %v1822_v34, %v1611_v33 }
0x1789   :  { %v1466_v36 = vpop.f32.mrf.mxu1 }
0x178a   :  { %1923 = vtanh.f32 %v1472_v35  ;;  %v1467_v20 = vadd.f32 %v1611_v33, %v1466_v36 }
0x178b   :  { %v1825_v37 = vpop.f32.mrf.mxu1 }
0x178c   :  { %1925 = vtanh.f32 %v1467_v20  ;;  %v1482_v39 = vadd.f32 %v1825_v37, %v1611_v33 }
0x178d   :  { %v1476_v40 = vpop.f32.mrf.mxu1 }
0x178e   :  { %1927 = vtanh.f32 %v1482_v39  ;;  %v1477_v41 = vadd.f32 %v1611_v33, %v1476_v40 }
0x178f   :  { %v1828_v42 = vpop.f32.mrf.mxu1 }
0x1790   :  { %1929 = vtanh.f32 %v1477_v41  ;;  %v1492_v21 = vadd.f32 %v1828_v42, %v1611_v33 }
0x1791   :  { %v1486_v43 = vpop.f32.mrf.mxu1 }
0x1792   :  { %1931 = vtanh.f32 %v1492_v21  ;;  %v1487_v23 = vadd.f32 %v1611_v33, %v1486_v43 }
0x1794   :  { %1933 = vtanh.f32 %v1487_v23 }
0x1797   :  { %v1924_v3 = vpop.eup %1923 }
0x1798   :  { %v1539_v24 = vsel %vm1515_vm7, %v1924_v3, 0.0 }
0x1799   :  { %v1926_v26 = vpop.eup %1925  ;;  %1547 = vst.msk [vmem:[#allocation5 + $0x8] sm:$0xff] %vm306_vm9, %v1539_v24 }
0x179a   :  { %v1538_v45 = vsel %vm1514_vm10, %v1926_v26, 0.0 }
0x179b   :  { %v1928_v46 = vpop.eup %1927  ;;  %1546 = vst.msk [vmem:[#allocation5] sm:$0xff] %vm306_vm9, %v1538_v45 }
0x179c   :  { %v1541_v47 = vsel %vm1517_vm11, %v1928_v46, 0.0 }
0x179d   :  { %v1930_v48 = vpop.eup %1929  ;;  %1549 = vst.msk [vmem:[#allocation5 + $0x18] sm:$0xff] %vm306_vm9, %v1541_v47 }
0x179e   :  { %v1540_v49 = vsel %vm1516_vm12, %v1930_v48, 0.0 }
0x179f   :  { %v1932_v50 = vpop.eup %1931  ;;  %1548 = vst.msk [vmem:[#allocation5 + $0x10] sm:$0xff] %vm306_vm9, %v1540_v49 }
0x17a0   :  { %v1543_v10 = vsel %vm1519_vm13, %v1932_v50, 0.0 }
0x17a1   :  { %v1934_v51 = vpop.eup %1933  ;;  %1551 = vst.msk [vmem:[#allocation5 + $0x28] sm:$0xff] %vm306_vm9, %v1543_v10 }
0x17a2   :  { %v1542_v52 = vsel %vm1518_vm14, %v1934_v51, 0.0 }
0x17a3   :  { %1550 = vst.msk [vmem:[#allocation5 + $0x20] sm:$0xff] %vm306_vm9, %v1542_v52 }
0x17fc   :  { %v1831_v53 = vpop.f32.mrf.mxu1 }
0x17fd   :  { %v1502_v54 = vadd.f32 %v1831_v53, %v1611_v33 }
0x17fe   :  { %v1496_v55 = vpop.f32.mrf.mxu1 }
0x17ff   :  { %1935 = vtanh.f32 %v1502_v54  ;;  %v1497_v56 = vadd.f32 %v1611_v33, %v1496_v55 }
0x1801   :  { %1937 = vtanh.f32 %v1497_v56 }
0x180c   :  { %v1936_v57 = vpop.eup %1935 }
0x180d   :  { %v1545_v58 = vsel %vm1521_vm15, %v1936_v57, 0.0 }
0x180e   :  { %v1938_v59 = vpop.eup %1937  ;;  %1553 = vst.msk [vmem:[#allocation5 + $0x38] sm:$0xff] %vm306_vm9, %v1545_v58 }
0x180f   :  { %v1544_v60 = vsel %vm1520_vm1, %v1938_v59, 0.0 }
0x1810   :  { %1552 = vst.msk [vmem:[#allocation5 + $0x30] sm:$0xff] %vm306_vm9, %v1544_v60 }
0x1811   :  { %1950 = shalt.err (!%p1947_p4)
}
0x1812   :  { %s1968_s16 = smov 128   ;;  %s1969_s6 = smov 8  }
0x1813   :  { %1565 = dma.vmem_to_hbm [thread:$0]  %s1560_s10, 1024, %s2358_s11, [#allocation6], %s1968_s16, %s1968_s16, %s1969_s6  }
0x1814   :  { %1959 = dma.done.wait [#allocation6], 1024  }
0x1815   :  { %1960 = vsyncadd [#allocation6], 4294966272 }
0x1816   :  { %1569 = vsyncpa [#allocation6], 1 }

</bundles_post_ra>
